<compile_context>
chip_gen: v5e
topology: v5e:2x2
jax: 0.10.0
libtpu: 0.0.40
codegen_flags: <defaults>
</compile_context>

<pallas_src>
import jax
import jax.numpy as jnp
from jax.experimental import pallas as pl
from jax.experimental.pallas import tpu as pltpu


def _round_up(x, m):
    return ((x + m - 1) // m) * m


def _choose_batch_tile(B, tm_max):
    """Batch tile: as large as possible (HBM-bound => big tiles), a multiple of
    128, but keep >= 2 grid steps when B allows so dimension_semantics
    ('parallel',) can split the batch across v7x's two TensorCores."""
    tm = min(tm_max, _round_up(B, 128))
    if tm > 128 and pl.cdiv(B, tm) < 2:
        tm = max(128, _round_up(pl.cdiv(B, 2), 128))
    return tm


def _vmem_limit_bytes():
    # ~3/4 of physical VMEM, capped at 100 MiB:
    #   v5e/v6e (128 MiB) -> 96 MiB, v7x (64 MiB per TC) -> 48 MiB.
    try:
        cap = pltpu.get_tpu_info().vmem_capacity_bytes
    except Exception:
        cap = 64 * 1024 * 1024  # conservative fallback (v7x per-TC)
    return int(min((cap * 3) // 4, 100 * 1024 * 1024))


def affine_coupling_kernel(xa_ref, xb_ref, w_ref, b_ref, out_ref, logdet_ref):
    d = out_ref.shape[-1]
    # Single fused MXU pass: y = xB @ [Wm | Wa] + [bm | ba]  (f32 accumulation).
    y = jnp.dot(xb_ref[...].astype(w_ref.dtype), w_ref[...],
                preferred_element_type=jnp.float32) + b_ref[...]
    mout = y[:, :d]            # m(xB)  (f32), 128-aligned slice
    aout = y[:, d:]            # a(xB)  (f32)
    # ACL(xA, xB) = exp(m(xB)) * xA + a(xB) -- elementwise strictly in f32.
    out_ref[...] = (jnp.exp(mout) * xa_ref[...].astype(jnp.float32)
                    + aout).astype(out_ref.dtype)
    # log|det J_{xA}| diagonal contribution: row-sum of m(xB), one f32 per row.
    logdet_ref[...] = jnp.sum(mout, axis=-1, keepdims=True)


def fuse_affine_coupling_params(Wm, bm, Wa, ba, *, mxu_dtype=jnp.bfloat16):
    """Fuse the two Linear layers into one (D, 2D) weight and (1, 2D) bias.

    Call ONCE at parameter-setup time (not per forward call) so the concat +
    cast does not add an HBM pass per step.
    """
    w_fused = jnp.concatenate([Wm, Wa], axis=1).astype(mxu_dtype)
    b_fused = jnp.concatenate([bm, ba])[None, :].astype(jnp.float32)
    return w_fused, b_fused


def affine_coupling(xA, xB, w_fused, b_fused, *, tm=512, out_dtype=None):
    """Fused affine-coupling forward.

    Returns (out (B, D), logdet (B,) float32) where
        out    = exp(xB @ Wm + bm) * xA + (xB @ Wa + ba)
        logdet = (xB @ Wm + bm).sum(-1)
    """
    B, D = xA.shape
    assert xB.shape == (B, D)
    assert w_fused.shape == (D, 2 * D) and b_fused.shape == (1, 2 * D)
    if D % 128 != 0:
        # TODO(synk): pad the weight columns (and adjust the in-kernel slices)
        # to support feature dims that are not 128-aligned.
        raise ValueError(f"feature dim D={D} must be a multiple of 128")
    out_dtype = xA.dtype if out_dtype is None else out_dtype

    tm = _choose_batch_tile(B, tm)
    grid = (pl.cdiv(B, tm),)   # ragged last block handled by Pallas; no jnp.pad.

    bytes_accessed = (
        B * D * xA.dtype.itemsize                # xA
        + B * D * xB.dtype.itemsize              # xB
        + D * 2 * D * w_fused.dtype.itemsize     # fused weight (VMEM-resident)
        + 2 * D * 4                              # fused bias
        + B * D * jnp.dtype(out_dtype).itemsize  # out
        + B * 4                                  # logdet column
    )
    cost = pl.CostEstimate(
        flops=2 * B * D * (2 * D) + 5 * B * D,
        transcendentals=B * D,
        bytes_accessed=bytes_accessed,
    )

    out, logdet = pl.pallas_call(
        affine_coupling_kernel,
        out_shape=(
            jax.ShapeDtypeStruct((B, D), out_dtype),
            jax.ShapeDtypeStruct((B, 1), jnp.float32),
        ),
        grid=grid,
        in_specs=[
            pl.BlockSpec((tm, D), lambda i: (i, 0)),        # xA tile
            pl.BlockSpec((tm, D), lambda i: (i, 0)),        # xB tile
            pl.BlockSpec((D, 2 * D), lambda i: (0, 0)),     # fused W (resident)
            pl.BlockSpec((1, 2 * D), lambda i: (0, 0)),     # fused bias (resident)
        ],
        out_specs=(
            pl.BlockSpec((tm, D), lambda i: (i, 0)),        # out tile (lane-dense)
            pl.BlockSpec((tm, 1), lambda i: (i, 0)),        # logdet column, 4 B/row
        ),
        compiler_params=pltpu.CompilerParams(
            dimension_semantics=("parallel",),              # megacore / v7x 2-TC split
            vmem_limit_bytes=_vmem_limit_bytes(),
        ),
        cost_estimate=cost,
    )(xA, xB, w_fused, b_fused)

    # TODO(synk): for D beyond a few K (bf16 fused weight = 4*D^2 bytes), switch
    # to a (B/tm, N/tn, K/tk) grid with the contraction axis last ('arbitrary'),
    # an f32 VMEM accumulator, and pipeline_mode=pl.Buffered(1) on the weight
    # spec so the resident weight is not double-buffered (matters on v7x 64 MiB).
    return out, logdet[:, 0]


if __name__ == "__main__":
    # Small but MXU/lane-friendly demo shapes: 256 batch rows (2 tiles of 128,
    # keeps the parallel grid >= 2 steps), 256 features (128-aligned).
    B, D = 256, 256

    key = jax.random.PRNGKey(0)
    k_xa, k_xb, k_wm, k_bm, k_wa, k_ba = jax.random.split(key, 6)

    xA = jax.random.normal(k_xa, (B, D), dtype=jnp.float32)
    xB = jax.random.normal(k_xb, (B, D), dtype=jnp.float32)

    # Deterministic Linear (D -> D) parameters for m and a, scaled small so
    # exp(m(xB)) stays well-conditioned.
    Wm = jax.random.normal(k_wm, (D, D), dtype=jnp.float32) * 0.02
    bm = jax.random.normal(k_bm, (D,), dtype=jnp.float32) * 0.02
    Wa = jax.random.normal(k_wa, (D, D), dtype=jnp.float32) * 0.02
    ba = jax.random.normal(k_ba, (D,), dtype=jnp.float32) * 0.02

    # Fuse once at parameter-setup time (hoisted out of the per-call path).
    w_fused, b_fused = fuse_affine_coupling_params(Wm, bm, Wa, ba)

    fwd = jax.jit(affine_coupling)
    out, logdet = fwd(xA, xB, w_fused, b_fused)
    jax.block_until_ready((out, logdet))
    assert out.shape == (B, D) and logdet.shape == (B,)

    # --- Tight check: reference using the same bf16 quantization of the MXU
    # operands (exactly what the kernel computes, f32-accumulated).
    xb_q = xB.astype(jnp.bfloat16).astype(jnp.float32)
    wm_q = Wm.astype(jnp.bfloat16).astype(jnp.float32)
    wa_q = Wa.astype(jnp.bfloat16).astype(jnp.float32)
    mout_q = xb_q @ wm_q + bm
    out_q = jnp.exp(mout_q) * xA + (xb_q @ wa_q + ba)
    logdet_q = mout_q.sum(axis=-1)
    assert jnp.allclose(out, out_q, atol=2e-3, rtol=2e-3)
    assert jnp.allclose(logdet, logdet_q, atol=1e-2, rtol=1e-3)

    # --- Loose sanity check vs. full-f32 module semantics (bf16 weight feed
    # introduces small, bounded deviation).
    mout_f = xB @ Wm + bm
    out_f = jnp.exp(mout_f) * xA + (xB @ Wa + ba)
    logdet_f = mout_f.sum(axis=-1)
    assert jnp.max(jnp.abs(out - out_f)) < 0.15
    assert jnp.max(jnp.abs(logdet - logdet_f)) < 0.5

    print("KERNEL_OK")
</pallas_src>

<mosaic_0001>
module attributes {stable_mosaic.version = 11 : i64} {
  func.func @affine_coupling_kernel(%arg0: i32, %arg1: memref<128x256xf32, #tpu.memory_space<vmem>>, %arg2: memref<128x256xf32, #tpu.memory_space<vmem>>, %arg3: memref<256x512xbf16, #tpu.memory_space<vmem>>, %arg4: memref<1x512xf32, #tpu.memory_space<vmem>>, %arg5: memref<128x256xf32, #tpu.memory_space<vmem>>, %arg6: memref<128x1xf32, #tpu.memory_space<vmem>>) attributes {dimension_semantics = [#tpu.dimension_semantics<parallel>], iteration_bounds = array<i64: 2>, scalar_prefetch = 0 : i64, scratch_operands = 0 : i64, tpu.core_type = #tpu.core_type<tc>, window_params = [{transform_indices = @transform_0, window_bounds = array<i64: 128, 256>}, {transform_indices = @transform_1, window_bounds = array<i64: 128, 256>}, {pipeline_mode = #tpu.pipeline_mode<synchronous>, transform_indices = @transform_2, window_bounds = array<i64: 256, 512>}, {pipeline_mode = #tpu.pipeline_mode<synchronous>, transform_indices = @transform_3, window_bounds = array<i64: 1, 512>}, {transform_indices = @transform_4, window_bounds = array<i64: 128, 256>}, {transform_indices = @transform_5, window_bounds = array<i64: 128, 1>}]} {
    %c0 = arith.constant 0 : index
    %c0_0 = arith.constant 0 : index
    %0 = vector.load %arg2[%c0, %c0_0] : memref<128x256xf32, #tpu.memory_space<vmem>>, vector<128x256xf32>
    %1 = arith.truncf %0 : vector<128x256xf32> to vector<128x256xbf16>
    %c0_1 = arith.constant 0 : index
    %c0_2 = arith.constant 0 : index
    %2 = vector.load %arg3[%c0_1, %c0_2] : memref<256x512xbf16, #tpu.memory_space<vmem>>, vector<256x512xbf16>
    %cst = arith.constant dense<0.000000e+00> : vector<128x512xf32>
    %3 = tpu.matmul %1, %2, %cst {dimension_numbers = #tpu.dot_dimension_numbers<[1], [0], [0], [1], [0, 0, 1, 1], [], []>} : vector<128x256xbf16>, vector<256x512xbf16>, vector<128x512xf32> -> vector<128x512xf32>
    %c0_3 = arith.constant 0 : index
    %c0_4 = arith.constant 0 : index
    %4 = vector.load %arg4[%c0_3, %c0_4] : memref<1x512xf32, #tpu.memory_space<vmem>>, vector<1x512xf32>
    %5 = vector.broadcast %4 : vector<1x512xf32> to vector<128x512xf32>
    %6 = arith.addf %3, %5 : vector<128x512xf32>
    %7 = vector.extract_strided_slice %6 {offsets = [0, 0], sizes = [128, 256], strides = [1, 1]} : vector<128x512xf32> to vector<128x256xf32>
    %8 = vector.extract_strided_slice %6 {offsets = [0, 256], sizes = [128, 256], strides = [1, 1]} : vector<128x512xf32> to vector<128x256xf32>
    %9 = math.exp %7 : vector<128x256xf32>
    %c0_5 = arith.constant 0 : index
    %c0_6 = arith.constant 0 : index
    %10 = vector.load %arg1[%c0_5, %c0_6] : memref<128x256xf32, #tpu.memory_space<vmem>>, vector<128x256xf32>
    %11 = arith.mulf %9, %10 : vector<128x256xf32>
    %12 = arith.addf %11, %8 : vector<128x256xf32>
    %c0_7 = arith.constant 0 : index
    %c0_8 = arith.constant 0 : index
    %13 = vector.load %arg5[%c0_7, %c0_8] : memref<128x256xf32, #tpu.memory_space<vmem>>, vector<128x256xf32>
    tpu.vector_store %arg5[%c0_7, %c0_8], %12 {strides = array<i32>} : memref<128x256xf32, #tpu.memory_space<vmem>>, vector<128x256xf32>,
    %cst_9 = arith.constant dense<0.000000e+00> : vector<128xf32>
    %14 = vector.multi_reduction <add>, %7, %cst_9 [1] : vector<128x256xf32> to vector<128xf32>
    %15 = vector.shape_cast %14 : vector<128xf32> to vector<128x1xf32>
    %c0_10 = arith.constant 0 : index
    %c0_11 = arith.constant 0 : index
    %16 = vector.load %arg6[%c0_10, %c0_11] : memref<128x1xf32, #tpu.memory_space<vmem>>, vector<128x1xf32>
    tpu.vector_store %arg6[%c0_10, %c0_11], %15 {strides = array<i32>} : memref<128x1xf32, #tpu.memory_space<vmem>>, vector<128x1xf32>,
    return
  }
  func.func @transform_0(%arg0: i32) -> (i32, i32) {
    %c0_i32 = arith.constant 0 : i32
    %c0_i32_0 = arith.constant 0 : i32
    return %arg0, %c0_i32 : i32, i32
  }
  func.func @transform_1(%arg0: i32) -> (i32, i32) {
    %c0_i32 = arith.constant 0 : i32
    %c0_i32_0 = arith.constant 0 : i32
    return %arg0, %c0_i32 : i32, i32
  }
  func.func @transform_2(%arg0: i32) -> (i32, i32) {
    %c0_i32 = arith.constant 0 : i32
    %c0_i32_0 = arith.constant 0 : i32
    %c0_i32_1 = arith.constant 0 : i32
    return %c0_i32, %c0_i32_0 : i32, i32
  }
  func.func @transform_3(%arg0: i32) -> (i32, i32) {
    %c0_i32 = arith.constant 0 : i32
    %c0_i32_0 = arith.constant 0 : i32
    %c0_i32_1 = arith.constant 0 : i32
    return %c0_i32, %c0_i32_0 : i32, i32
  }
  func.func @transform_4(%arg0: i32) -> (i32, i32) {
    %c0_i32 = arith.constant 0 : i32
    %c0_i32_0 = arith.constant 0 : i32
    return %arg0, %c0_i32 : i32, i32
  }
  func.func @transform_5(%arg0: i32) -> (i32, i32) {
    %c0_i32 = arith.constant 0 : i32
    %c0_i32_0 = arith.constant 0 : i32
    return %arg0, %c0_i32 : i32, i32
  }
}

</mosaic_0001>

<bundles_post_ra>
// kernel: affine_coupling.1
= control target key start
LH: loop header
LB: loop body
LE: loop exit
PB: predicated region body
PF: predicated region fallthrough
CT: control target
= control target key end

     0   :  { %s2952_s0 = inlined_call_operand.hbm [shape: f32[256,256], index: 0, kind: input, shape index: {}]   ;;  %s2953_s1 = inlined_call_operand.hbm [shape: f32[256,256], index: 1, kind: input, shape index: {}]   ;;  %s2954_s2 = inlined_call_operand.hbm [shape: bf16[256,512], index: 2, kind: input, shape index: {}]   ;;  %s2955_s3 = inlined_call_operand.hbm [shape: f32[1,512], index: 3, kind: input, shape index: {}]   ;;  %s2956_s4 = inlined_call_operand.hbm [shape: f32[256,256], index: 4, kind: output, shape index: {0}]   ;;  %s2957_s5 = inlined_call_operand.vmem [shape: f32[256,1], index: 5, kind: output, shape index: {1}]  }
   0x1   :  { %2962 = sst [smem:[#allocation17_spill]] %s2952_s0 }
   0x2   :  { %2963 = sst [smem:[#allocation18_spill]] %s2954_s2 }
   0x3   :  { %2964 = sst [smem:[#allocation19_spill]] %s2955_s3 }
   0x4   :  { %11 = vsyncpa [#allocation3], 0 }
   0x5   :  { %13 = vsyncpa [#allocation3 + $0x1], 0 }
   0x6   :  { %14 = vsyncpa [#allocation6], 0 }
   0x7   :  { %16 = vsyncpa [#allocation6 + $0x1], 0 }
   0x8   :  { %17 = vsyncpa [#allocation9], 0 }
   0x9   :  { %18 = vsyncpa [#allocation4], 0 }
   0xa   :  { %20 = vsyncpa [#allocation4 + $0x1], 0  ;;  %s2323_s18 = smov 0   ;;  %s2325_s19 = smov 0  }
   0xb   :  { %s2327_s20 = smov 0   ;;  %s2329_s21 = smov 0  }
   0xc LB: > { %s2344_s22 = sadd.s32 4294967295, %s2285_s21   ;;  %s1594_s23 = sadd.s32 4294967294, %s2285_s21   ;;  %s2285_s21 = sphi %s2329_s21, %s2981_s21   ;;  %s2281_s20 = sphi %s2327_s20, %s2980_s20   ;;  %s2277_s19 = sphi %s2325_s19, %s2979_s19   ;;  %s2273_s18 = sphi %s2323_s18, %s2978_s18  }
   0xd   : > { %p46_p0 = scmp.ne.s32.totalorder %s2277_s19, %s2273_s18  ;;  %p47_p1 = scmp.eq.s32.totalorder %s2344_s22, 0 }
   0xe   : > { %p138_p2 = scmp.eq.s32.totalorder %s2344_s22, 1  ;;  %p144_p3 = scmp.eq.s32.totalorder %s1594_s23, 1 }
   0xf   : > { %p2353_p4 = por %p47_p1, %p46_p0  ;;  %p1595_p5 = scmp.ge.s32.totalorder %s2285_s21, 1 }
  0x10   : > { %p2358_p6 = por %p144_p3, %p46_p0  ;;  %p177_p7 = scmp.lt.s32.totalorder %s2285_s21, 3 }
  0x11   : > { %s2967_s2 = sld [smem:[#allocation18_spill]]  ;;  %s2287_s30 = smov [#allocation7]  }
  0x12   : > { %p2366_p8 = pnand %p1595_p5, %p177_p7  ;;  %s190_s6 = sshll.u32 %s2287_s30, 4  ;;  %s191_s6 = int_to_ptr.vmem [resolvable:$true] %s190_s6 }
  0x13   : > { %s2969_s3 = sld [smem:[#allocation19_spill]]  ;;  %s2958_s10 = smov 256  }
  0x14   : > { %p1961_p9 = pneg %p2366_p8  ;;  %s2960_s11 = smov 16  }
  0x15   : > { %s2290_s12 = smov [#allocation8]   ;;  %s2382_s14 = sadd.s32 1, %s2285_s21  }
  0x16   : > { %p1962_p10 = pnand %p1961_p9, %p47_p1  ;;  %s205_s13 = sshll.u32 %s2290_s12, 4  ;;  %s206_s13 = int_to_ptr.vmem [resolvable:$true] %s205_s13 }
  0x17   : > { %s188_s28 = sshll.u32 %s2967_s2, 4  ;;  %s33_s15 = sadd.s32 1, %s2281_s20  ;;  %s189_s28 = int_to_ptr.hbm [resolvable:$true] %s188_s28 }
  0x18   : > { %1964 = dma.hbm_to_vmem [thread:$0]  (!%p1962_p10), %s189_s28, 8192, %s191_s6, [#allocation6], %s2958_s10, %s2958_s10, %s2960_s11  }
  0x19   : > { %s203_s9 = sshll.u32 %s2969_s3, 4  ;;  %s30_s16 = ssub.s32 %s2285_s21, %s2382_s14  ;;  %s204_s9 = int_to_ptr.hbm [resolvable:$true] %s203_s9 }
  0x1a   : > { %1967 = dma.hbm_to_vmem [thread:$0]  (!%p1962_p10), %s204_s9, 64, %s206_s13, [#allocation9]  }
  0x1b   : > { %p40_p12 = scmp.ne.s32.totalorder %s2281_s20, %s2277_s19  ;;  %p31_p13 = scmp.eq.s32.totalorder %s30_s16, 0 }
  0x1c   : > { %p41_p0 = scmp.eq.s32.totalorder %s2285_s21, 0  ;;  %p1981_p5 = scmp.lt.s32.totalorder %s2285_s21, 2 }
  0x1d   : > { %p2392_p3 = por %p138_p2, %p40_p12  ;;  %s216_s26 = sand.u32 1, %s2281_s20  }
  0x1e   : > { %s2398_s23 = scalar_select %p31_p13, %s2281_s20, %s33_s15  }
  0x1f   : > { %p42_p7 = por %p41_p0, %p40_p12  ;;  %s2401_s27 = sshll.u32 %s216_s26, 8 }
  0x20   : > { %2971 = sst [smem:[#allocation16_spill]] %s2398_s23  ;;  %s1878_s28 = sshll.u32 %s2285_s21, 8 }
  0x21   : > { %s2972_s0 = sld [smem:[#allocation17_spill]]  ;;  %s220_s8 = scalar_lea.vmem [#allocation2], %s2401_s27 }
  0x22   : > { %s229_s9 = sshll.u32 %s220_s8, 4  ;;  %p2408_p2 = pnand %p1981_p5, %p42_p7  ;;  %s230_s9 = int_to_ptr.vmem [resolvable:$true] %s229_s9 }
  0x23   : > { %s249_s10 = scalar_lea.hbm %s2953_s1, %s1878_s28  ;;  %s217_s2 = scalar_lea.sflag [#allocation3], %s216_s26 }
  0x24   : > { %s250_s11 = sshll.u32 %s249_s10, 4  ;;  %p2151_p10 = pneg %p2408_p2  ;;  %s251_s11 = int_to_ptr.hbm [resolvable:$true] %s250_s11 }
  0x27   : > { %s226_s7 = scalar_lea.hbm %s2972_s0, %s1878_s28  ;;  %s2154_s8 = scalar_lea.hbm %s2972_s0, 512 }
  0x28   : > { %s227_s12 = sshll.u32 %s226_s7, 4  ;;  %s228_s12 = int_to_ptr.hbm [resolvable:$true] %s227_s12 }
  0x29   : > { %s2147_s3 = sshra.s32 %s228_s12, 4  ;;  %s2148_s3 = int_to_ptr.hbm [resolvable:$true] %s2147_s3 }
  0x2a   : > { %s2149_s30 = scalar_lea.hbm %s2148_s3, 256  ;;  %p2155_p0 = scmp.lt.s32.totalorder %s2148_s3, %s2972_s0 }
  0x2b   : > { %p2150_p9 = scmp.ne.s32.totalorder %s2148_s3, %s2149_s30  ;;  %p2156_p5 = scmp.lt.s32.totalorder %s2154_s8, %s2149_s30 }
  0x2d   : > { %p2152_p12 = pnand %p2151_p10, %p2150_p9  ;;  %p2157_p7 = por %p2156_p5, %p2155_p0 }
  0x2f   : > { %p2153_p13 = pneg %p2152_p12 }
  0x31   : > { %p2158_p11 = pnand %p2157_p7, %p2153_p13 }
  0x33   : > { %2161 = shalt.err (!%p2158_p11)
}
  0x34   : > { %s2974_s10 = smov 16   ;;  %s2975_s26 = smov 256  }
  0x35   : > { %1971 = dma.hbm_to_vmem [thread:$0]  (!%p2408_p2), %s228_s12, 4096, %s230_s9, %s217_s2, %s2975_s26, %s2975_s26, %s2974_s10  }
  0x36   : > { %s243_s28 = scalar_lea.vmem [#allocation5], %s2401_s27  ;;  %s239_s7 = sand.u32 1, %s2285_s21  }
  0x37   : > { %s252_s6 = sshll.u32 %s243_s28, 4  ;;  %s240_s15 = scalar_lea.sflag [#allocation6], %s239_s7  ;;  %s253_s6 = int_to_ptr.vmem [resolvable:$true] %s252_s6 }
  0x38   : > { %s2177_s3 = sshra.s32 %s251_s11, 4  ;;  %s2184_s0 = scalar_lea.hbm %s2953_s1, 512  ;;  %s2178_s3 = int_to_ptr.hbm [resolvable:$true] %s2177_s3 }
  0x39   : > { %s2179_s30 = scalar_lea.hbm %s2178_s3, 256  ;;  %p2185_p13 = scmp.lt.s32.totalorder %s2178_s3, %s2953_s1 }
  0x3a   : > { %p2180_p9 = scmp.ne.s32.totalorder %s2178_s3, %s2179_s30  ;;  %p2186_p0 = scmp.lt.s32.totalorder %s2184_s0, %s2179_s30 }
  0x3c   : > { %p2182_p11 = pnand %p2180_p9, %p2151_p10  ;;  %p2187_p5 = por %p2186_p0, %p2185_p13 }
  0x3e   : > { %p2183_p12 = pneg %p2182_p11 }
  0x40   : > { %p2188_p7 = pnand %p2187_p5, %p2183_p12 }
  0x42   : > { %2191 = shalt.err (!%p2188_p7)
}
  0x43   : > { %1974 = dma.hbm_to_vmem [thread:$0]  (!%p2408_p2), %s251_s11, 4096, %s253_s6, %s240_s15, %s2975_s26, %s2975_s26, %s2974_s10  }
  0x44   : > { %264 = sbr.rel (%p2366_p8) target bundleno = 507 (0x1fb), region = 36  ;;  %s2450_s27 = sand.u32 (!%p2366_p8), 1, %s2277_s19  }
  0x45   : > { %s2453_s23 = sshll.u32 (!%p2366_p8), %s2450_s27, 8  ;;  %s267_s0 = scalar_lea.sflag (!%p2366_p8), [#allocation3], %s2450_s27 }
  0x46   : > { %s2457_s9 = scalar_lea.vmem (!%p2366_p8), [#allocation2], %s2453_s23 }
  0x49   : > { %2252 = dma.done.wait (%p2353_p4), %s267_s0, 4096  }
  0x4a   : > { %2254 = vsyncadd (%p2353_p4), %s267_s0, 4294963200  ;;  %s276_s29 = sand.u32 1, %s2344_s22   ;;  %s2465_s12 = scalar_lea.vmem [#allocation5], %s2453_s23 }
  0x4b   : > { %s277_s11 = scalar_lea.sflag [#allocation6], %s276_s29 }
  0x4c   : > { %2256 = dma.done.wait (%p2353_p4), %s277_s11, 4096  }
  0x4d   : > { %2258 = vsyncadd (%p2353_p4), %s277_s11, 4294963200 }
  0x4e   : > { %2260 = dma.done.wait (%p47_p1), [#allocation6], 8192  }
  0x4f   : > { %2262 = vsyncadd (%p47_p1), [#allocation6], 4294959104 }
  0x50   : > { %2264 = dma.done.wait (%p47_p1), [#allocation9], 64  }
  0x51   : > { %2266 = vsyncadd (%p47_p1), [#allocation9], 4294967232  ;;  %v1729_v0 = vld [vmem:[#allocation7 + $0xe0] sm:$0xf]  ;;  %v1911_v1 = vld [vmem:[#allocation7 + $0xec] sm:$0xf0] }
  0x52   : > { %v1857_v2 = vld [vmem:[#allocation7 + $0x1e0] sm:$0xf]  ;;  %v1730_v3 = vor.u32 %v1911_v1, %v1729_v0  ;;  %v1943_v4 = vld [vmem:[#allocation7 + $0x1ec] sm:$0xf0]  ;;  %v1909_v5 = vld [vmem:[#allocation7 + $0xe4] sm:$0xf] }
  0x53   : > { %v1731_v6 = vld [vmem:[#allocation7 + $0xf0] sm:$0xf0]  ;;  %v1858_v7 = vor.u32 %v1943_v4, %v1857_v2  ;;  %v1941_v9 = vld [vmem:[#allocation7 + $0x1e4] sm:$0xf]  ;;  %v1713_v11 = vld [vmem:[#allocation7 + $0xc0] sm:$0xf] }
  0x54   : > { %v1734_v8 = vor.u32 %v1909_v5, %v1731_v6  ;;  %v1859_v10 = vld [vmem:[#allocation7 + $0x1f0] sm:$0xf0]  ;;  %779 = vmatpush.bf16.msra.mxu0 %v1730_v3  ;;  %v1907_v13 = vld [vmem:[#allocation7 + $0xcc] sm:$0xf0]  ;;  %v1841_v14 = vld [vmem:[#allocation7 + $0x1c0] sm:$0xf] }
  0x55   : > { %v1862_v12 = vor.u32 %v1941_v9, %v1859_v10  ;;  %v1939_v15 = vld [vmem:[#allocation7 + $0x1cc] sm:$0xf0]  ;;  %828 = vmatpush.bf16.msra.mxu1 %v1858_v7  ;;  %v1714_v16 = vor.u32 %v1907_v13, %v1713_v11  ;;  %v1905_v18 = vld [vmem:[#allocation7 + $0xc4] sm:$0xf]  ;;  %v1715_v19 = vld [vmem:[#allocation7 + $0xd0] sm:$0xf0] }
  0x56   : > { %877 = vmatpush.bf16.msra.mxu2 %v1734_v8  ;;  %v1842_v17 = vor.u32 %v1939_v15, %v1841_v14  ;;  %v1937_v20 = vld [vmem:[#allocation7 + $0x1c4] sm:$0xf]  ;;  %v1718_v21 = vor.u32 %v1905_v18, %v1715_v19  ;;  %v1843_v22 = vld [vmem:[#allocation7 + $0x1d0] sm:$0xf0]  ;;  %v1697_v23 = vld [vmem:[#allocation7 + $0xa0] sm:$0xf] }
  0x57   : > { %926 = vmatpush.bf16.msra.mxu3 %v1862_v12  ;;  %v1903_v24 = vld [vmem:[#allocation7 + $0xac] sm:$0xf0]  ;;  %v1846_v25 = vor.u32 %v1937_v20, %v1843_v22  ;;  %v1825_v26 = vld [vmem:[#allocation7 + $0x1a0] sm:$0xf]  ;;  %v1901_v28 = vld [vmem:[#allocation7 + $0xa4] sm:$0xf] }
  0x58   : > { %v1935_v27 = vld [vmem:[#allocation7 + $0x1ac] sm:$0xf0]  ;;  %780 = vmatpush.bf16.msra.mxu0 %v1714_v16  ;;  %v1698_v29 = vor.u32 %v1903_v24, %v1697_v23  ;;  %v1699_v30 = vld [vmem:[#allocation7 + $0xb0] sm:$0xf0]  ;;  %v1933_v31 = vld [vmem:[#allocation7 + $0x1a4] sm:$0xf] }
  0x59   : > { %v1827_v32 = vld [vmem:[#allocation7 + $0x1b0] sm:$0xf0]  ;;  %829 = vmatpush.bf16.msra.mxu1 %v1842_v17  ;;  %v1826_v33 = vor.u32 %v1935_v27, %v1825_v26  ;;  %v1702_v34 = vor.u32 %v1901_v28, %v1699_v30  ;;  %v1681_v35 = vld [vmem:[#allocation7 + $0x80] sm:$0xf]  ;;  %v1899_v36 = vld [vmem:[#allocation7 + $0x8c] sm:$0xf0] }
  0x5a   : > { %878 = vmatpush.bf16.msra.mxu2 %v1718_v21  ;;  %v1809_v37 = vld [vmem:[#allocation7 + $0x180] sm:$0xf]  ;;  %v1830_v38 = vor.u32 %v1933_v31, %v1827_v32  ;;  %v1931_v39 = vld [vmem:[#allocation7 + $0x18c] sm:$0xf0]  ;;  %v1897_v40 = vld [vmem:[#allocation7 + $0x84] sm:$0xf]  ;;  %v1682_v44 = vor.u32 %v1899_v36, %v1681_v35 }
  0x5b   : > { %927 = vmatpush.bf16.msra.mxu3 %v1846_v25  ;;  %v1683_v41 = vld [vmem:[#allocation7 + $0x90] sm:$0xf0]  ;;  %v1929_v42 = vld [vmem:[#allocation7 + $0x184] sm:$0xf]  ;;  %v1810_v45 = vor.u32 %v1931_v39, %v1809_v37  ;;  %v1665_v47 = vld [vmem:[#allocation7 + $0x60] sm:$0xf] }
  0x5c   : > { %v1811_v43 = vld [vmem:[#allocation7 + $0x190] sm:$0xf0]  ;;  %781 = vmatpush.bf16.msra.mxu0 %v1698_v29  ;;  %v1686_v46 = vor.u32 %v1897_v40, %v1683_v41  ;;  %v1895_v48 = vld [vmem:[#allocation7 + $0x6c] sm:$0xf0]  ;;  %v1793_v49 = vld [vmem:[#allocation7 + $0x160] sm:$0xf] }
  0x5d   : > { %830 = vmatpush.bf16.msra.mxu1 %v1826_v33  ;;  %v1814_v50 = vor.u32 %v1929_v42, %v1811_v43  ;;  %v1927_v51 = vld [vmem:[#allocation7 + $0x16c] sm:$0xf0]  ;;  %v1893_v52 = vld [vmem:[#allocation7 + $0x64] sm:$0xf]  ;;  %v1667_v53 = vld [vmem:[#allocation7 + $0x70] sm:$0xf0]  ;;  %v1666_v56 = vor.u32 %v1895_v48, %v1665_v47 }
  0x5e   : > { %879 = vmatpush.bf16.msra.mxu2 %v1702_v34  ;;  %v1925_v54 = vld [vmem:[#allocation7 + $0x164] sm:$0xf]  ;;  %v1795_v55 = vld [vmem:[#allocation7 + $0x170] sm:$0xf0]  ;;  %v1794_v57 = vor.u32 %v1927_v51, %v1793_v49  ;;  %v1670_v58 = vor.u32 %v1893_v52, %v1667_v53  ;;  %v1649_v59 = vld [vmem:[#allocation7 + $0x40] sm:$0xf] }
  0x5f   : > { %928 = vmatpush.bf16.msra.mxu3 %v1830_v38  ;;  %v1891_v60 = vld [vmem:[#allocation7 + $0x4c] sm:$0xf0]  ;;  %v1777_v61 = vld [vmem:[#allocation7 + $0x140] sm:$0xf]  ;;  %v1798_v62 = vor.u32 %v1925_v54, %v1795_v55  ;;  %v1889_v0 = vld [vmem:[#allocation7 + $0x44] sm:$0xf] }
  0x60   : > { %782 = vmatpush.bf16.msra.mxu0 %v1682_v44  ;;  %v1923_v63 = vld [vmem:[#allocation7 + $0x14c] sm:$0xf0]  ;;  %v1651_v1 = vld [vmem:[#allocation7 + $0x50] sm:$0xf0]  ;;  %v1921_v2 = vld [vmem:[#allocation7 + $0x144] sm:$0xf]  ;;  %v1650_v4 = vor.u32 %v1891_v60, %v1649_v59 }
  0x61   : > { %831 = vmatpush.bf16.msra.mxu1 %v1810_v45  ;;  %v1779_v3 = vld [vmem:[#allocation7 + $0x150] sm:$0xf0]  ;;  %v1778_v5 = vor.u32 %v1923_v63, %v1777_v61  ;;  %v1654_v6 = vor.u32 %v1889_v0, %v1651_v1  ;;  %v1633_v7 = vld [vmem:[#allocation7 + $0x20] sm:$0xf]  ;;  %v1887_v8 = vld [vmem:[#allocation7 + $0x2c] sm:$0xf0] }
  0x62   : > { %880 = vmatpush.bf16.msra.mxu2 %v1686_v46  ;;  %v1761_v9 = vld [vmem:[#allocation7 + $0x120] sm:$0xf]  ;;  %v1782_v10 = vor.u32 %v1921_v2, %v1779_v3  ;;  %v1919_v11 = vld [vmem:[#allocation7 + $0x12c] sm:$0xf0]  ;;  %v1885_v12 = vld [vmem:[#allocation7 + $0x24] sm:$0xf]  ;;  %v1634_v16 = vor.u32 %v1887_v8, %v1633_v7 }
  0x63   : > { %929 = vmatpush.bf16.msra.mxu3 %v1814_v50  ;;  %v1635_v13 = vld [vmem:[#allocation7 + $0x30] sm:$0xf0]  ;;  %v1917_v14 = vld [vmem:[#allocation7 + $0x124] sm:$0xf]  ;;  %v1617_v17 = vld [vmem:[#allocation7] sm:$0xf]  ;;  %v1762_v19 = vor.u32 %v1919_v11, %v1761_v9 }
  0x64   : > { %783 = vmatpush.bf16.msra.mxu0 %v1666_v56  ;;  %v1763_v15 = vld [vmem:[#allocation7 + $0x130] sm:$0xf0]  ;;  %v1883_v18 = vld [vmem:[#allocation7 + $0xc] sm:$0xf0]  ;;  %v1638_v20 = vor.u32 %v1885_v12, %v1635_v13  ;;  %v1745_v21 = vld [vmem:[#allocation7 + $0x100] sm:$0xf] }
  0x65   : > { %832 = vmatpush.bf16.msra.mxu1 %v1794_v57  ;;  %v1915_v22 = vld [vmem:[#allocation7 + $0x10c] sm:$0xf0]  ;;  %v1881_v23 = vld [vmem:[#allocation7 + $0x4] sm:$0xf]  ;;  %v1766_v24 = vor.u32 %v1917_v14, %v1763_v15  ;;  %v1619_v25 = vld [vmem:[#allocation7 + $0x10] sm:$0xf0]  ;;  %v1618_v31 = vor.u32 %v1883_v18, %v1617_v17 }
  0x66   : > { %881 = vmatpush.bf16.msra.mxu2 %v1670_v58  ;;  %v1913_v26 = vld [vmem:[#allocation7 + $0x104] sm:$0xf]  ;;  %v1747_v27 = vld [vmem:[#allocation7 + $0x110] sm:$0xf0]  ;;  %v1910_v29 = vld [vmem:[#allocation7 + $0xec] sm:$0xf]  ;;  %v1746_v35 = vor.u32 %v1915_v22, %v1745_v21  ;;  %v1622_v36 = vor.u32 %v1881_v23, %v1619_v25 }
  0x67   : > { %930 = vmatpush.bf16.msra.mxu3 %v1798_v62  ;;  %v337_v28 = vld [vmem:[%s2465_s12] sm:$0xff]  ;;  %v1739_v30 = vld [vmem:[#allocation7 + $0xf8] sm:$0xf0]  ;;  %v339_v32 = vld [vmem:[%s2465_s12 + $0x10] sm:$0xff]  ;;  %v1750_v39 = vor.u32 %v1913_v26, %v1747_v27  ;;  %s1613_s24 = sshll.u32 %s2344_s22, 4  ;;  %vm1411_vm0 = vcmask 7168  }
  0x68   : > { %784 = vmatpush.bf16.msra.mxu0 %v1650_v4  ;;  %v1942_v33 = vld [vmem:[#allocation7 + $0x1ec] sm:$0xf]  ;;  %v1867_v34 = vld [vmem:[#allocation7 + $0x1f8] sm:$0xf0]  ;;  %v1742_v40 = vor.u32 %v1910_v29, %v1739_v30  ;;  %v1737_v41 = vld [vmem:[#allocation7 + $0xe8] sm:$0xf]  ;;  %v2483_v44 = vpack.c.bf16 %v339_v32, %v337_v28 }
  0x69   : > { %833 = vmatpush.bf16.msra.mxu1 %v1778_v5  ;;  %v338_v37 = vld [vmem:[%s2465_s12 + $0x8] sm:$0xff]  ;;  %v340_v38 = vld [vmem:[%s2465_s12 + $0x18] sm:$0xff]  ;;  %v1870_v45 = vor.u32 %v1942_v33, %v1867_v34  ;;  %v343_v11 = vld [vmem:[%s2465_s12 + $0x30] sm:$0xff]  ;;  %p332_p1 = scmp.lt.s32.totalorder %s1613_s24, 31  ;;  %s2765_s6 = scalar_lea.vmem [#allocation10], %s2453_s23 }
  0x6a   : > { %882 = vmatpush.bf16.msra.mxu2 %v1654_v6  ;;  %v1912_v42 = vld [vmem:[#allocation7 + $0xf4] sm:$0xf0]  ;;  %v1865_v43 = vld [vmem:[#allocation7 + $0x1e8] sm:$0xf]  ;;  %v1906_v47 = vld [vmem:[#allocation7 + $0xcc] sm:$0xf]  ;;  %v2485_v49 = vpack.c.bf16 %v340_v38, %v338_v37 }
  0x6b   : > { %931 = vmatpush.bf16.msra.mxu3 %v1782_v10  ;;  %v1944_v46 = vld [vmem:[#allocation7 + $0x1f4] sm:$0xf0]  ;;  %v1723_v48 = vld [vmem:[#allocation7 + $0xd8] sm:$0xf0]  ;;  %v1938_v50 = vld [vmem:[#allocation7 + $0x1cc] sm:$0xf]  ;;  %v1738_v52 = vor.u32 %v1912_v42, %v1737_v41 }
  0x6c   : > { %785 = vmatpush.bf16.msra.mxu0 %v1634_v16  ;;  %v1851_v51 = vld [vmem:[#allocation7 + $0x1d8] sm:$0xf0]  ;;  %v1866_v53 = vor.u32 %v1944_v46, %v1865_v43  ;;  %v1726_v54 = vor.u32 %v1906_v47, %v1723_v48  ;;  %v1721_v55 = vld [vmem:[#allocation7 + $0xc8] sm:$0xf]  ;;  %v1908_v56 = vld [vmem:[#allocation7 + $0xd4] sm:$0xf0] }
  0x6d   : > { %834 = vmatpush.bf16.msra.mxu1 %v1762_v19  ;;  %v1854_v57 = vor.u32 %v1938_v50, %v1851_v51  ;;  %v1849_v58 = vld [vmem:[#allocation7 + $0x1c8] sm:$0xf]  ;;  %v1940_v59 = vld [vmem:[#allocation7 + $0x1d4] sm:$0xf0]  ;;  %v1722_v60 = vor.u32 %v1908_v56, %v1721_v55  ;;  %v1902_v61 = vld [vmem:[#allocation7 + $0xac] sm:$0xf] }
  0x6e   : > { %883 = vmatpush.bf16.msra.mxu2 %v1638_v20  ;;  %v1707_v62 = vld [vmem:[#allocation7 + $0xb8] sm:$0xf0]  ;;  %v1934_v63 = vld [vmem:[#allocation7 + $0x1ac] sm:$0xf]  ;;  %v1850_v0 = vor.u32 %v1940_v59, %v1849_v58  ;;  %v1705_v3 = vld [vmem:[#allocation7 + $0xa8] sm:$0xf] }
  0x6f   : > { %932 = vmatpush.bf16.msra.mxu3 %v1766_v24  ;;  %v1710_v1 = vor.u32 %v1902_v61, %v1707_v62  ;;  %v1835_v2 = vld [vmem:[#allocation7 + $0x1b8] sm:$0xf0]  ;;  %v1904_v4 = vld [vmem:[#allocation7 + $0xb4] sm:$0xf0]  ;;  %v1833_v6 = vld [vmem:[#allocation7 + $0x1a8] sm:$0xf] }
  0x70   : > { %786 = vmatpush.bf16.msra.mxu0 %v1618_v31  ;;  %v1838_v5 = vor.u32 %v1934_v63, %v1835_v2  ;;  %v1936_v7 = vld [vmem:[#allocation7 + $0x1b4] sm:$0xf0]  ;;  %v1706_v8 = vor.u32 %v1904_v4, %v1705_v3  ;;  %v341_v10 = vld [vmem:[%s2465_s12 + $0x20] sm:$0xff]  ;;  %v342_v12 = vld [vmem:[%s2465_s12 + $0x28] sm:$0xff]  ;;  %s2983_s24 = smov (!%p332_p1, %s1613_s24), 31  ;;  %s1946_s7 = sshll.u32 %s2344_s22, 8 }
  0x71   : > { %835 = vmatpush.bf16.msra.mxu1 %v1746_v35  ;;  %v1834_v9 = vor.u32 %v1936_v7, %v1833_v6  ;;  %v344_v13 = vld [vmem:[%s2465_s12 + $0x38] sm:$0xff]  ;;  %v2495_v14 = vpack.c.bf16 %v343_v11, %v341_v10  ;;  %v1898_v16 = vld [vmem:[#allocation7 + $0x8c] sm:$0xf]  ;;  %v1689_v21 = vld [vmem:[#allocation7 + $0x88] sm:$0xf]  ;;  %s1614_s13 = sshll.u32 %s2983_s24, 3  ;;  %s1446_s30 = scalar_lea.hbm %s2956_s4, %s1946_s7 }
  0x72   : > { %884 = vmatpush.bf16.msra.mxu2 %v1622_v36  ;;  %v2497_v15 = vpack.c.bf16 %v344_v13, %v342_v12  ;;  %v1691_v17 = vld [vmem:[#allocation7 + $0x98] sm:$0xf0]  ;;  %v1930_v18 = vld [vmem:[#allocation7 + $0x18c] sm:$0xf]  ;;  %v1900_v22 = vld [vmem:[#allocation7 + $0x94] sm:$0xf0]  ;;  %s2746_s28 = scalar_lea.vmem %s2957_s5, %s1614_s13 }
  0x73   : > { %933 = vmatpush.bf16.msra.mxu3 %v1750_v39  ;;  %787 = vmatmul.bf16.vlgmr.msra.gmra.mxu0 %v2483_v44  ;;  %v1694_v19 = vor.u32 %v1898_v16, %v1691_v17  ;;  %v1819_v20 = vld [vmem:[#allocation7 + $0x198] sm:$0xf0]  ;;  %v1690_v24 = vor.u32 %v1900_v22, %v1689_v21  ;;  %v1817_v25 = vld [vmem:[#allocation7 + $0x188] sm:$0xf]  ;;  %v1932_v26 = vld [vmem:[#allocation7 + $0x194] sm:$0xf0] }
  0x74   : > { %836 = vmatmul.bf16.vlgmr.msra.gmra.mxu1 %v2485_v49  ;;  %975 = vmatpush.bf16.msrb.mxu0 %v1738_v52  ;;  %v1822_v23 = vor.u32 %v1930_v18, %v1819_v20  ;;  %v1818_v27 = vor.u32 %v1932_v26, %v1817_v25  ;;  %v345_v28 = vld [vmem:[%s2465_s12 + $0x40] sm:$0xff]  ;;  %v347_v29 = vld [vmem:[%s2465_s12 + $0x50] sm:$0xff]  ;;  %v346_v30 = vld [vmem:[%s2465_s12 + $0x48] sm:$0xff]  ;;  %s1447_s8 = sshll.u32 %s2765_s6, 4  ;;  %s1449_s22 = sshll.u32 %s1446_s30, 4  ;;  %s1448_s8 = int_to_ptr.vmem [resolvable:$true] %s1447_s8  ;;  %s1450_s22 = int_to_ptr.hbm [resolvable:$true] %s1449_s22 }
  0x75   : > { %885 = vmatmul.bf16.vlgmr.msra.gmra.mxu2 %v2483_v44  ;;  %1024 = vmatpush.bf16.msrb.mxu1 %v1866_v53  ;;  %v348_v31 = vld [vmem:[%s2465_s12 + $0x58] sm:$0xff]  ;;  %v2507_v32 = vpack.c.bf16 %v347_v29, %v345_v28  ;;  %v1894_v34 = vld [vmem:[#allocation7 + $0x6c] sm:$0xf]  ;;  %v1673_v39 = vld [vmem:[#allocation7 + $0x68] sm:$0xf]  ;;  %s1429_s16 = scalar_lea.sflag [#allocation4], %s2450_s27 }
  0x76   : > { %1073 = vmatpush.bf16.msrb.mxu2 %v1742_v40  ;;  %934 = vmatmul.bf16.vlgmr.msra.gmra.mxu3 %v2485_v49  ;;  %v2509_v33 = vpack.c.bf16 %v348_v31, %v346_v30  ;;  %v1675_v35 = vld [vmem:[#allocation7 + $0x78] sm:$0xf0]  ;;  %v1926_v36 = vld [vmem:[#allocation7 + $0x16c] sm:$0xf]  ;;  %v1896_v40 = vld [vmem:[#allocation7 + $0x74] sm:$0xf0] }
  0x77   : > { %1122 = vmatpush.bf16.msrb.mxu3 %v1870_v45  ;;  %v1678_v37 = vor.u32 %v1894_v34, %v1675_v35  ;;  %v1803_v38 = vld [vmem:[#allocation7 + $0x178] sm:$0xf0]  ;;  %v1674_v42 = vor.u32 %v1896_v40, %v1673_v39  ;;  %v1801_v43 = vld [vmem:[#allocation7 + $0x168] sm:$0xf]  ;;  %v1928_v45 = vld [vmem:[#allocation7 + $0x174] sm:$0xf0] }
  0x78   : > { %976 = vmatpush.bf16.msrb.mxu0 %v1722_v60  ;;  %v1806_v41 = vor.u32 %v1926_v36, %v1803_v38  ;;  %v1802_v46 = vor.u32 %v1928_v45, %v1801_v43  ;;  %v349_v47 = vld [vmem:[%s2465_s12 + $0x60] sm:$0xff]  ;;  %v351_v48 = vld [vmem:[%s2465_s12 + $0x70] sm:$0xff]  ;;  %v350_v50 = vld [vmem:[%s2465_s12 + $0x68] sm:$0xff]  ;;  %s2221_s2 = sshra.s32 %s1450_s22, 4  ;;  %s2227_s29 = scalar_lea.hbm %s2956_s4, 512  ;;  %s2222_s2 = int_to_ptr.hbm [resolvable:$true] %s2221_s2 }
  0x79   : > { %1025 = vmatpush.bf16.msrb.mxu1 %v1850_v0  ;;  %v352_v51 = vld [vmem:[%s2465_s12 + $0x78] sm:$0xff]  ;;  %v2519_v52 = vpack.c.bf16 %v351_v48, %v349_v47  ;;  %v1922_v56 = vld [vmem:[#allocation7 + $0x14c] sm:$0xf]  ;;  %v1657_v59 = vld [vmem:[#allocation7 + $0x48] sm:$0xf]  ;;  %s2223_s23 = scalar_lea.hbm %s2222_s2, 256  ;;  %p2228_p10 = scmp.lt.s32.totalorder %s2222_s2, %s2956_s4 }
  0x7a   : > { %1074 = vmatpush.bf16.msrb.mxu2 %v1726_v54  ;;  %v2521_v53 = vpack.c.bf16 %v352_v51, %v350_v50  ;;  %v1890_v54 = vld [vmem:[#allocation7 + $0x4c] sm:$0xf]  ;;  %v1659_v55 = vld [vmem:[#allocation7 + $0x58] sm:$0xf0]  ;;  %v1892_v60 = vld [vmem:[#allocation7 + $0x54] sm:$0xf0]  ;;  %p2224_p4 = scmp.ne.s32.totalorder %s2222_s2, %s2223_s23  ;;  %p2229_p9 = scmp.lt.s32.totalorder %s2227_s29, %s2223_s23 }
  0x7b   : > { %1123 = vmatpush.bf16.msrb.mxu3 %v1854_v57  ;;  %v1662_v57 = vor.u32 %v1890_v54, %v1659_v55  ;;  %v1787_v58 = vld [vmem:[#allocation7 + $0x158] sm:$0xf0]  ;;  %v1658_v62 = vor.u32 %v1892_v60, %v1657_v59  ;;  %v1785_v63 = vld [vmem:[#allocation7 + $0x148] sm:$0xf]  ;;  %v1924_v0 = vld [vmem:[#allocation7 + $0x154] sm:$0xf0] }
  0x7c   : > { %977 = vmatpush.bf16.msrb.mxu0 %v1706_v8  ;;  %v1790_v61 = vor.u32 %v1922_v56, %v1787_v58  ;;  %v353_v2 = vld [vmem:[%s2465_s12 + $0x80] sm:$0xff]  ;;  %v355_v3 = vld [vmem:[%s2465_s12 + $0x90] sm:$0xff]  ;;  %v354_v4 = vld [vmem:[%s2465_s12 + $0x88] sm:$0xff]  ;;  %p2225_p8 = pnand %p2224_p4, %p2392_p3  ;;  %p2230_p11 = por %p2229_p9, %p2228_p10 }
  0x7d   : > { %1026 = vmatpush.bf16.msrb.mxu1 %v1834_v9  ;;  %v2531_v6 = vpack.c.bf16 %v355_v3, %v353_v2  ;;  %v1886_v8 = vld [vmem:[#allocation7 + $0x2c] sm:$0xf]  ;;  %v1643_v9 = vld [vmem:[#allocation7 + $0x38] sm:$0xf0]  ;;  %v1641_v13 = vld [vmem:[#allocation7 + $0x28] sm:$0xf] }
  0x7e   : > { %1075 = vmatpush.bf16.msrb.mxu2 %v1710_v1  ;;  %v1786_v1 = vor.u32 %v1924_v0, %v1785_v63  ;;  %v1918_v10 = vld [vmem:[#allocation7 + $0x12c] sm:$0xf]  ;;  %v1646_v11 = vor.u32 %v1886_v8, %v1643_v9  ;;  %v1771_v12 = vld [vmem:[#allocation7 + $0x138] sm:$0xf0]  ;;  %v1888_v16 = vld [vmem:[#allocation7 + $0x34] sm:$0xf0]  ;;  %p2226_p2 = pneg %p2225_p8 }
  0x7f   : > { %1124 = vmatpush.bf16.msrb.mxu3 %v1838_v5  ;;  %v356_v5 = vld [vmem:[%s2465_s12 + $0x98] sm:$0xff]  ;;  %v1774_v17 = vor.u32 %v1918_v10, %v1771_v12  ;;  %v1642_v18 = vor.u32 %v1888_v16, %v1641_v13  ;;  %v357_v22 = vld [vmem:[%s2465_s12 + $0xa0] sm:$0xff]  ;;  %v1882_v28 = vld [vmem:[#allocation7 + $0xc] sm:$0xf] }
  0x80   : > { %978 = vmatpush.bf16.msrb.mxu0 %v1690_v24  ;;  %v2533_v7 = vpack.c.bf16 %v356_v5, %v354_v4  ;;  %v1920_v20 = vld [vmem:[#allocation7 + $0x134] sm:$0xf0]  ;;  %v358_v24 = vld [vmem:[%s2465_s12 + $0xa8] sm:$0xff]  ;;  %v1627_v29 = vld [vmem:[#allocation7 + $0x18] sm:$0xf0]  ;;  %p2231_p12 = pnand %p2230_p11, %p2226_p2 }
  0x81   : > { %1027 = vmatpush.bf16.msrb.mxu1 %v1818_v27  ;;  %v360_v25 = vld [vmem:[%s2465_s12 + $0xb8] sm:$0xff]  ;;  %v1914_v30 = vld [vmem:[#allocation7 + $0x10c] sm:$0xf]  ;;  %v1630_v31 = vor.u32 %v1882_v28, %v1627_v29  ;;  %v1625_v35 = vld [vmem:[#allocation7 + $0x8] sm:$0xf] }
  0x82   : > { %1076 = vmatpush.bf16.msrb.mxu2 %v1694_v19  ;;  %v1769_v19 = vld [vmem:[#allocation7 + $0x128] sm:$0xf]  ;;  %v2545_v27 = vpack.c.bf16 %v360_v25, %v358_v24  ;;  %v1755_v34 = vld [vmem:[#allocation7 + $0x118] sm:$0xf0]  ;;  %v1884_v36 = vld [vmem:[#allocation7 + $0x14] sm:$0xf0] }
  0x83   : > { %792 = vmatmul.bf16.gmra.mxu0 %v2495_v14  ;;  %1125 = vmatpush.bf16.msrb.mxu3 %v1822_v23  ;;  %v1770_v21 = vor.u32 %v1920_v20, %v1769_v19  ;;  %v359_v23 = vld [vmem:[%s2465_s12 + $0xb0] sm:$0xff]  ;;  %v1626_v38 = vor.u32 %v1884_v36, %v1625_v35  ;;  %v1753_v39 = vld [vmem:[#allocation7 + $0x108] sm:$0xf]  ;;  %v1916_v40 = vld [vmem:[#allocation7 + $0x114] sm:$0xf0] }
  0x84   : > { %841 = vmatmul.bf16.gmra.mxu1 %v2497_v15  ;;  %979 = vmatpush.bf16.msrb.mxu0 %v1674_v42  ;;  %v2543_v26 = vpack.c.bf16 %v359_v23, %v357_v22  ;;  %v361_v42 = vld [vmem:[%s2465_s12 + $0xc0] sm:$0xff]  ;;  %v363_v43 = vld [vmem:[%s2465_s12 + $0xd0] sm:$0xff]  ;;  %v362_v45 = vld [vmem:[%s2465_s12 + $0xc8] sm:$0xff] }
  0x85   : > { %890 = vmatmul.bf16.gmra.mxu2 %v2495_v14  ;;  %1028 = vmatpush.bf16.msrb.mxu1 %v1802_v46  ;;  %v364_v46 = vld [vmem:[%s2465_s12 + $0xd8] sm:$0xff]  ;;  %v2555_v47 = vpack.c.bf16 %v363_v43, %v361_v42  ;;  %v365_v50 = vld [vmem:[%s2465_s12 + $0xe0] sm:$0xff]  ;;  %v367_v51 = vld [vmem:[%s2465_s12 + $0xf0] sm:$0xff] }
  0x86   : > { %939 = vmatmul.bf16.gmra.mxu3 %v2497_v15  ;;  %1077 = vmatpush.bf16.msrb.mxu2 %v1678_v37  ;;  %v1758_v37 = vor.u32 %v1914_v30, %v1755_v34  ;;  %v2557_v48 = vpack.c.bf16 %v364_v46, %v362_v45  ;;  %v366_v54 = vld [vmem:[%s2465_s12 + $0xe8] sm:$0xff]  ;;  %v368_v55 = vld [vmem:[%s2465_s12 + $0xf8] sm:$0xff]  ;;  %v2567_v56 = vpack.c.bf16 %v367_v51, %v365_v50  ;;  %v2575_v58 = vld [vmem:[#allocation8] sm:$0xf] }
  0x87   : > { %1126 = vmatpush.bf16.msrb.mxu3 %v1806_v41  ;;  %v1754_v41 = vor.u32 %v1916_v40, %v1753_v39  ;;  %v2578_v59 = vperm.slane %v2575_v58, 0  ;;  %v2585_v63 = vperm.slane %v2575_v58, 1 }
  0x88   : > { %980 = vmatpush.bf16.msrb.mxu0 %v1658_v62 }
  0x89   : > { %1029 = vmatpush.bf16.msrb.mxu1 %v1786_v1 }
  0x8a   : > { %1078 = vmatpush.bf16.msrb.mxu2 %v1662_v57  ;;  %v2569_v57 = vpack.c.bf16 %v368_v55, %v366_v54 }
  0x8b   : > { %1127 = vmatpush.bf16.msrb.mxu3 %v1790_v61 }
  0x8c   : > { %981 = vmatpush.bf16.msrb.mxu0 %v1642_v18 }
  0x8d   : > { %1030 = vmatpush.bf16.msrb.mxu1 %v1770_v21 }
  0x8e   : > { %1079 = vmatpush.bf16.msrb.mxu2 %v1646_v11 }
  0x8f   : > { %1128 = vmatpush.bf16.msrb.mxu3 %v1774_v17 }
  0x90   : > { %982 = vmatpush.bf16.msrb.mxu0 %v1626_v38 }
  0x91   : > { %1031 = vmatpush.bf16.msrb.mxu1 %v1754_v41 }
  0x92   : > { %1080 = vmatpush.bf16.msrb.mxu2 %v1630_v31 }
  0x93   : > { %797 = vmatmul.bf16.gmra.mxu0 %v2507_v32  ;;  %1129 = vmatpush.bf16.msrb.mxu3 %v1758_v37 }
  0x94   : > { %846 = vmatmul.bf16.gmra.mxu1 %v2509_v33 }
  0x95   : > { %895 = vmatmul.bf16.gmra.mxu2 %v2507_v32 }
  0x96   : > { %944 = vmatmul.bf16.gmra.mxu3 %v2509_v33 }
  0xa3   : > { %802 = vmatmul.bf16.gmra.mxu0 %v2519_v52 }
  0xa4   : > { %851 = vmatmul.bf16.gmra.mxu1 %v2521_v53 }
  0xa5   : > { %900 = vmatmul.bf16.gmra.mxu2 %v2519_v52 }
  0xa6   : > { %949 = vmatmul.bf16.gmra.mxu3 %v2521_v53 }
  0xb3   : > { %807 = vmatmul.bf16.gmra.mxu0 %v2531_v6 }
  0xb4   : > { %856 = vmatmul.bf16.gmra.mxu1 %v2533_v7 }
  0xb5   : > { %905 = vmatmul.bf16.gmra.mxu2 %v2531_v6 }
  0xb6   : > { %954 = vmatmul.bf16.gmra.mxu3 %v2533_v7 }
  0xc3   : > { %812 = vmatmul.bf16.gmra.mxu0 %v2543_v26 }
  0xc4   : > { %861 = vmatmul.bf16.gmra.mxu1 %v2545_v27 }
  0xc5   : > { %910 = vmatmul.bf16.gmra.mxu2 %v2543_v26 }
  0xc6   : > { %959 = vmatmul.bf16.gmra.mxu3 %v2545_v27 }
  0xd3   : > { %817 = vmatmul.bf16.gmra.mxu0 %v2555_v47 }
  0xd4   : > { %866 = vmatmul.bf16.gmra.mxu1 %v2557_v48 }
  0xd5   : > { %915 = vmatmul.bf16.gmra.mxu2 %v2555_v47 }
  0xd6   : > { %964 = vmatmul.bf16.gmra.mxu3 %v2557_v48 }
  0xe3   : > { %822 = vmatmul.bf16.gmra.mxu0 %v2567_v56 }
  0xe4   : > { %871 = vmatmul.bf16.gmra.mxu1 %v2569_v57 }
  0xe5   : > { %920 = vmatmul.bf16.gmra.mxu2 %v2567_v56 }
  0xe6   : > { %969 = vmatmul.bf16.gmra.mxu3 %v2569_v57 }
  0xf0   : > { %v788_v60 = vpop.f32.mrf.mxu0 }
  0xf1   : > { %v837_v61 = vpop.f32.mrf.mxu1  ;;  %v789_v62 = vadd.f32 %v788_v60, %v2578_v59 }
  0xf3   : > { %983 = vmatmul.bf16.vlgmr.msrb.gmra.mxu0 %v2483_v44  ;;  %v2588_v1 = vadd.f32 %v837_v61, %v789_v62 }
  0xf4   : > { %1032 = vmatmul.bf16.vlgmr.msrb.gmra.mxu1 %v2485_v49 }
  0xf5   : > { %1081 = vmatmul.bf16.vlgmr.msrb.gmra.mxu2 %v2483_v44 }
  0xf6   : > { %1130 = vmatmul.bf16.vlgmr.msrb.gmra.mxu3 %v2485_v49 }
  0xf8   : > { %v886_v0 = vpop.f32.mrf.mxu2  ;;  %v790_v4 = vpop.f32.mrf.mxu0 }
  0xf9   : > { %v887_v2 = vadd.f32 %v886_v0, %v2585_v63  ;;  %v935_v3 = vpop.f32.mrf.mxu3  ;;  %v839_v5 = vpop.f32.mrf.mxu1  ;;  %v791_v44 = vadd.f32 %v790_v4, %v2578_v59 }
  0xfb   : > { %v2591_v8 = vadd.f32 %v935_v3, %v887_v2  ;;  %v2597_v16 = vadd.f32 %v839_v5, %v791_v44 }
  0xfd   : > { %v1363_v9 = vadd.f32 %v2591_v8, %v2588_v1 }
  0xff   : > { %1364 = vadd.xlane.f32.xlu0 %v1363_v9 }
 0x100   : > { %v888_v10 = vpop.f32.mrf.mxu2  ;;  %v793_v12 = vpop.f32.mrf.mxu0 }
 0x101   : > { %v889_v11 = vadd.f32 %v888_v10, %v2585_v63  ;;  %v937_v49 = vpop.f32.mrf.mxu3  ;;  %v842_v13 = vpop.f32.mrf.mxu1  ;;  %v794_v18 = vadd.f32 %v793_v12, %v2578_v59 }
 0x103   : > { %v2599_v17 = vadd.f32 %v937_v49, %v889_v11  ;;  %988 = vmatmul.bf16.gmra.mxu0 %v2495_v14  ;;  %v2608_v21 = vadd.f32 %v842_v13, %v794_v18 }
 0x104   : > { %1037 = vmatmul.bf16.gmra.mxu1 %v2497_v15 }
 0x105   : > { %1086 = vmatmul.bf16.gmra.mxu2 %v2495_v14  ;;  %v1366_v19 = vadd.f32 %v2599_v17, %v2597_v16 }
 0x106   : > { %1135 = vmatmul.bf16.gmra.mxu3 %v2497_v15 }
 0x107   : > { %1367 = vadd.xlane.f32.xlu0 %v1366_v19 }
 0x108   : > { %v891_v20 = vpop.f32.mrf.mxu2  ;;  %v795_v24 = vpop.f32.mrf.mxu0 }
 0x109   : > { %v892_v22 = vadd.f32 %v891_v20, %v2585_v63  ;;  %v940_v23 = vpop.f32.mrf.mxu3  ;;  %v844_v25 = vpop.f32.mrf.mxu1  ;;  %v796_v14 = vadd.f32 %v795_v24, %v2578_v59 }
 0x10b   : > { %v2611_v28 = vadd.f32 %v940_v23, %v892_v22  ;;  %v2617_v36 = vadd.f32 %v844_v25, %v796_v14 }
 0x10d   : > { %v1369_v29 = vadd.f32 %v2611_v28, %v2608_v21 }
 0x10f   : > { %1370 = vadd.xlane.f32.xlu1 %v1369_v29 }
 0x110   : > { %v893_v30 = vpop.f32.mrf.mxu2  ;;  %v798_v34 = vpop.f32.mrf.mxu0 }
 0x111   : > { %v894_v15 = vadd.f32 %v893_v30, %v2585_v63  ;;  %v942_v31 = vpop.f32.mrf.mxu3  ;;  %v847_v35 = vpop.f32.mrf.mxu1  ;;  %v799_v38 = vadd.f32 %v798_v34, %v2578_v59 }
 0x113   : > { %v2619_v37 = vadd.f32 %v942_v31, %v894_v15  ;;  %993 = vmatmul.bf16.gmra.mxu0 %v2507_v32  ;;  %v2628_v41 = vadd.f32 %v847_v35, %v799_v38 }
 0x114   : > { %1042 = vmatmul.bf16.gmra.mxu1 %v2509_v33 }
 0x115   : > { %1091 = vmatmul.bf16.gmra.mxu2 %v2507_v32  ;;  %v1372_v39 = vadd.f32 %v2619_v37, %v2617_v36 }
 0x116   : > { %1140 = vmatmul.bf16.gmra.mxu3 %v2509_v33 }
 0x117   : > { %1373 = vadd.xlane.f32.xlu1 %v1372_v39 }
 0x118   : > { %v896_v40 = vpop.f32.mrf.mxu2  ;;  %v800_v45 = vpop.f32.mrf.mxu0 }
 0x119   : > { %v897_v42 = vadd.f32 %v896_v40, %v2585_v63  ;;  %v945_v43 = vpop.f32.mrf.mxu3  ;;  %v849_v46 = vpop.f32.mrf.mxu1  ;;  %v801_v32 = vadd.f32 %v800_v45, %v2578_v59 }
 0x11b   : > { %v2631_v50 = vadd.f32 %v945_v43, %v897_v42  ;;  %v2637_v62 = vadd.f32 %v849_v46, %v801_v32 }
 0x11d   : > { %v1375_v51 = vadd.f32 %v2631_v50, %v2628_v41 }
 0x11f   : > { %1376 = vadd.xlane.f32.xlu2 %v1375_v51 }
 0x120   : > { %v898_v54 = vpop.f32.mrf.mxu2  ;;  %v803_v60 = vpop.f32.mrf.mxu0 }
 0x121   : > { %v899_v33 = vadd.f32 %v898_v54, %v2585_v63  ;;  %v947_v55 = vpop.f32.mrf.mxu3  ;;  %v852_v61 = vpop.f32.mrf.mxu1  ;;  %v804_v2 = vadd.f32 %v803_v60, %v2578_v59 }
 0x123   : > { %v2639_v0 = vadd.f32 %v947_v55, %v899_v33  ;;  %998 = vmatmul.bf16.gmra.mxu0 %v2519_v52  ;;  %v2648_v5 = vadd.f32 %v852_v61, %v804_v2 }
 0x124   : > { %1047 = vmatmul.bf16.gmra.mxu1 %v2521_v53 }
 0x125   : > { %1096 = vmatmul.bf16.gmra.mxu2 %v2519_v52  ;;  %v1378_v3 = vadd.f32 %v2639_v0, %v2637_v62 }
 0x126   : > { %1145 = vmatmul.bf16.gmra.mxu3 %v2521_v53 }
 0x127   : > { %1379 = vadd.xlane.f32.xlu2 %v1378_v3 }
 0x128   : > { %v901_v4 = vpop.f32.mrf.mxu2  ;;  %v805_v10 = vpop.f32.mrf.mxu0 }
 0x129   : > { %v902_v9 = vadd.f32 %v901_v4, %v2585_v63  ;;  %v950_v44 = vpop.f32.mrf.mxu3  ;;  %v854_v11 = vpop.f32.mrf.mxu1  ;;  %v806_v52 = vadd.f32 %v805_v10, %v2578_v59 }
 0x12b   : > { %v2651_v49 = vadd.f32 %v950_v44, %v902_v9  ;;  %v2657_v22 = vadd.f32 %v854_v11, %v806_v52 }
 0x12d   : > { %v1381_v12 = vadd.f32 %v2651_v49, %v2648_v5 }
 0x12f   : > { %1382 = vadd.xlane.f32.xlu0 %v1381_v12 }
 0x130   : > { %v903_v13 = vpop.f32.mrf.mxu2  ;;  %v808_v19 = vpop.f32.mrf.mxu0 }
 0x131   : > { %v904_v53 = vadd.f32 %v903_v13, %v2585_v63  ;;  %v952_v18 = vpop.f32.mrf.mxu3  ;;  %v857_v20 = vpop.f32.mrf.mxu1  ;;  %v809_v24 = vadd.f32 %v808_v19, %v2578_v59 }
 0x133   : > { %v2659_v23 = vadd.f32 %v952_v18, %v904_v53  ;;  %1003 = vmatmul.bf16.gmra.mxu0 %v2531_v6  ;;  %v2668_v14 = vadd.f32 %v857_v20, %v809_v24 }
 0x134   : > { %1052 = vmatmul.bf16.gmra.mxu1 %v2533_v7 }
 0x135   : > { %1101 = vmatmul.bf16.gmra.mxu2 %v2531_v6  ;;  %v1384_v25 = vadd.f32 %v2659_v23, %v2657_v22 }
 0x136   : > { %1150 = vmatmul.bf16.gmra.mxu3 %v2533_v7 }
 0x137   : > { %1385 = vadd.xlane.f32.xlu1 %v1384_v25 }
 0x138   : > { %v906_v29 = vpop.f32.mrf.mxu2  ;;  %v810_v31 = vpop.f32.mrf.mxu0 }
 0x139   : > { %v907_v30 = vadd.f32 %v906_v29, %v2585_v63  ;;  %v955_v15 = vpop.f32.mrf.mxu3  ;;  %v859_v34 = vpop.f32.mrf.mxu1  ;;  %v811_v6 = vadd.f32 %v810_v31, %v2578_v59 }
 0x13b   : > { %v2671_v35 = vadd.f32 %v955_v15, %v907_v30  ;;  %v2677_v45 = vadd.f32 %v859_v34, %v811_v6 }
 0x13d   : > { %v1387_v38 = vadd.f32 %v2671_v35, %v2668_v14 }
 0x13f   : > { %1388 = vadd.xlane.f32.xlu2 %v1387_v38 }
 0x140   : > { %v908_v39 = vpop.f32.mrf.mxu2  ;;  %v813_v42 = vpop.f32.mrf.mxu0 }
 0x141   : > { %v909_v7 = vadd.f32 %v908_v39, %v2585_v63  ;;  %v957_v40 = vpop.f32.mrf.mxu3  ;;  %v862_v43 = vpop.f32.mrf.mxu1  ;;  %v814_v51 = vadd.f32 %v813_v42, %v2578_v59 }
 0x143   : > { %v2679_v46 = vadd.f32 %v957_v40, %v909_v7  ;;  %1008 = vmatmul.bf16.gmra.mxu0 %v2543_v26  ;;  %v2688_v33 = vadd.f32 %v862_v43, %v814_v51  ;;  %v1171_v43 = vmul.f32 1.442695, %v2588_v1  ;;  %v2739_v1 = vperm.slane %v2575_v58, 2 }
 0x144   : > { %1057 = vmatmul.bf16.gmra.mxu1 %v2545_v27 }
 0x145   : > { %1106 = vmatmul.bf16.gmra.mxu2 %v2543_v26  ;;  %v1390_v32 = vadd.f32 %v2679_v46, %v2677_v45  ;;  %2023 = vpow2.f32 %v1171_v43 }
 0x146   : > { %1155 = vmatmul.bf16.gmra.mxu3 %v2545_v27 }
 0x147   : > { %1391 = vadd.xlane.f32.xlu0 %v1390_v32 }
 0x148   : > { %v911_v54 = vpop.f32.mrf.mxu2  ;;  %v815_v61 = vpop.f32.mrf.mxu0 }
 0x149   : > { %v912_v55 = vadd.f32 %v911_v54, %v2585_v63  ;;  %v960_v60 = vpop.f32.mrf.mxu3  ;;  %v864_v2 = vpop.f32.mrf.mxu1  ;;  %v816_v26 = vadd.f32 %v815_v61, %v2578_v59 }
 0x14b   : > { %v2691_v3 = vadd.f32 %v960_v60, %v912_v55  ;;  %v2697_v12 = vadd.f32 %v864_v2, %v816_v26 }
 0x14d   : > { %v1393_v4 = vadd.f32 %v2691_v3, %v2688_v33 }
 0x14f   : > { %1394 = vadd.xlane.f32.xlu1 %v1393_v4  ;;  %v1175_v4 = vmul.f32 1.442695, %v2597_v16 }
 0x150   : > { %v913_v9 = vpop.f32.mrf.mxu2  ;;  %v818_v10 = vpop.f32.mrf.mxu0 }
 0x151   : > { %v914_v27 = vadd.f32 %v913_v9, %v2585_v63  ;;  %v962_v44 = vpop.f32.mrf.mxu3  ;;  %v867_v11 = vpop.f32.mrf.mxu1  ;;  %v819_v13 = vadd.f32 %v818_v10, %v2578_v59 }
 0x153   : > { %v2699_v52 = vadd.f32 %v962_v44, %v914_v27  ;;  %1013 = vmatmul.bf16.gmra.mxu0 %v2555_v47  ;;  %v2708_v19 = vadd.f32 %v867_v11, %v819_v13  ;;  %v2024_v27 = vpop.eup %2023  ;;  %v1235_v11 = vld [vmem:[%s2457_s9] sm:$0xff] }
 0x154   : > { %1062 = vmatmul.bf16.gmra.mxu1 %v2557_v48 }
 0x155   : > { %1111 = vmatmul.bf16.gmra.mxu2 %v2555_v47  ;;  %v1396_v53 = vadd.f32 %v2699_v52, %v2697_v12 }
 0x156   : > { %1160 = vmatmul.bf16.gmra.mxu3 %v2557_v48 }
 0x157   : > { %1397 = vadd.xlane.f32.xlu2 %v1396_v53 }
 0x158   : > { %v916_v18 = vpop.f32.mrf.mxu2  ;;  %v820_v25 = vpop.f32.mrf.mxu0 }
 0x159   : > { %v917_v20 = vadd.f32 %v916_v18, %v2585_v63  ;;  %v965_v24 = vpop.f32.mrf.mxu3  ;;  %v869_v29 = vpop.f32.mrf.mxu1  ;;  %v821_v15 = vadd.f32 %v820_v25, %v2578_v59  ;;  %v2760_v25 = vperm.slane %v2575_v58, 3 }
 0x15b   : > { %v2711_v30 = vadd.f32 %v965_v24, %v917_v20  ;;  %v2718_v39 = vadd.f32 %v869_v29, %v821_v15  ;;  %v1267_v24 = vmul.f32 %v2024_v27, %v1235_v11  ;;  %v1177_v29 = vmul.f32 1.442695, %v2599_v17  ;;  %v1238_v27 = vld [vmem:[%s2457_s9 + $0x18] sm:$0xff] }
 0x15c   : > { %v1179_v15 = vmul.f32 1.442695, %v2608_v21 }
 0x15d   : > { %v1399_v47 = vadd.f32 %v2711_v30, %v2708_v19 }
 0x15f   : > { %1400 = vadd.xlane.f32.xlu0 %v1399_v47 }
 0x160   : > { %v918_v31 = vpop.f32.mrf.mxu2  ;;  %v823_v38 = vpop.f32.mrf.mxu0 }
 0x161   : > { %v919_v48 = vadd.f32 %v918_v31, %v2585_v63  ;;  %v967_v34 = vpop.f32.mrf.mxu3  ;;  %v872_v6 = vpop.f32.mrf.mxu1  ;;  %v824_v40 = vadd.f32 %v823_v38, %v2578_v59 }
 0x163   : > { %v2720_v7 = vadd.f32 %v967_v34, %v919_v48  ;;  %1018 = vmatmul.bf16.gmra.mxu0 %v2567_v56  ;;  %v2730_v32 = vadd.f32 %v872_v6, %v824_v40  ;;  %v1236_v34 = vld [vmem:[%s2457_s9 + $0x8] sm:$0xff] }
 0x164   : > { %1067 = vmatmul.bf16.gmra.mxu1 %v2569_v57 }
 0x165   : > { %1116 = vmatmul.bf16.gmra.mxu2 %v2567_v56  ;;  %v1402_v42 = vadd.f32 %v2720_v7, %v2718_v39 }
 0x166   : > { %1165 = vmatmul.bf16.gmra.mxu3 %v2569_v57  ;;  %v1173_v57 = vmul.f32 1.442695, %v2591_v8 }
 0x167   : > { %1403 = vadd.xlane.f32.xlu1 %v1402_v42  ;;  %v1237_v42 = vld [vmem:[%s2457_s9 + $0x10] sm:$0xff] }
 0x168   : > { %v921_v51 = vpop.f32.mrf.mxu2  ;;  %v825_v60 = vpop.f32.mrf.mxu0  ;;  %2025 = vpow2.f32 %v1173_v57 }
 0x169   : > { %v922_v54 = vadd.f32 %v921_v51, %v2585_v63  ;;  %v970_v55 = vpop.f32.mrf.mxu3  ;;  %v874_v61 = vpop.f32.mrf.mxu1  ;;  %v826_v26 = vadd.f32 %v825_v60, %v2578_v59  ;;  %2027 = vpow2.f32 %v1175_v4  ;;  %v1183_v4 = vmul.f32 1.442695, %v2617_v36 }
 0x16a   : > { %2029 = vpow2.f32 %v1177_v29 }
 0x16b   : > { %v2733_v56 = vadd.f32 %v970_v55, %v922_v54  ;;  %v2751_v53 = vadd.f32 %v874_v61, %v826_v26  ;;  %2031 = vpow2.f32 %v1179_v15 }
 0x16d   : > { %v1405_v2 = vadd.f32 %v2733_v56, %v2730_v32 }
 0x16e   : > { %v2026_v31 = vpop.eup %2025 }
 0x16f   : > { %1406 = vadd.xlane.f32.xlu2 %v1405_v2  ;;  %v2028_v38 = vpop.eup %2027  ;;  %v1268_v54 = vmul.f32 %v2026_v31, %v1236_v34  ;;  %v1181_v2 = vmul.f32 1.442695, %v2611_v28  ;;  %v1187_v31 = vmul.f32 1.442695, %v2628_v41 }
 0x170   : > { %v923_v9 = vpop.f32.mrf.mxu2  ;;  %v984_v10 = vpop.f32.mrf.mxu0  ;;  %v1269_v60 = vmul.f32 %v2028_v38, %v1237_v42  ;;  %v1240_v38 = vld [vmem:[%s2457_s9 + $0x28] sm:$0xff] }
 0x171   : > { %v924_v44 = vadd.f32 %v923_v9, %v2585_v63  ;;  %v972_v8 = vpop.f32.mrf.mxu3  ;;  %v985_v16 = vadd.f32 %v984_v10, %v2739_v1  ;;  %v1033_v59 = vpop.f32.mrf.mxu1  ;;  %2033 = vpow2.f32 %v1181_v2 }
 0x172   : > { %v1365_v13 = vpop.xlane.xlu0 %1364  ;;  %v2030_v26 = vpop.eup %2029  ;;  %2035 = vpow2.f32 %v1183_v4 }
 0x173   : > { %v2753_v18 = vadd.f32 %v972_v8, %v924_v44  ;;  %1412 = vst.msk [vmem:[%s2746_s28] sm:$0xff] %vm1411_vm0, %v1365_v13  ;;  %v1034_v20 = vadd.f32 %v1033_v59, %v985_v16  ;;  %v2032_v44 = vpop.eup %2031  ;;  %v1239_v16 = vld [vmem:[%s2457_s9 + $0x20] sm:$0xff] }
 0x175   : > { %v1408_v63 = vadd.f32 %v2753_v18, %v2751_v53  ;;  %v1299_v47 = vadd.f32 %v1267_v24, %v1034_v20  ;;  %v1270_v20 = vmul.f32 %v2030_v26, %v1238_v27 }
 0x177   : > { %1409 = vadd.xlane.f32.xlu0 %v1408_v63  ;;  %1331 = vst [vmem:[%s2765_s6] sm:$0xff] %v1299_v47  ;;  %v1271_v63 = vmul.f32 %v2032_v44, %v1239_v16  ;;  %v1185_v47 = vmul.f32 1.442695, %v2619_v37 }
 0x178   : > { %v1082_v48 = vpop.f32.mrf.mxu2  ;;  %v986_v58 = vpop.f32.mrf.mxu0 }
 0x179   : > { %v1083_v6 = vadd.f32 %v1082_v48, %v2760_v25  ;;  %v1131_v40 = vpop.f32.mrf.mxu3  ;;  %v987_v17 = vadd.f32 %v986_v58, %v2739_v1  ;;  %v1035_v21 = vpop.f32.mrf.mxu1  ;;  %2037 = vpow2.f32 %v1185_v47 }
 0x17a   : > { %v1368_v43 = vpop.xlane.xlu0 %1367  ;;  %v2034_v48 = vpop.eup %2033  ;;  %2039 = vpow2.f32 %v1187_v31  ;;  %v1244_v31 = vld [vmem:[%s2457_s9 + $0x48] sm:$0xff] }
 0x17b   : > { %v1132_v51 = vadd.f32 %v1131_v40, %v1083_v6  ;;  %1413 = vst.msk [vmem:[%s2746_s28 + $0x8] sm:$0xff] %vm1411_vm0, %v1368_v43  ;;  %v1036_v55 = vadd.f32 %v1035_v21, %v987_v17  ;;  %v2036_v6 = vpop.eup %2035  ;;  %v1241_v17 = vld [vmem:[%s2457_s9 + $0x30] sm:$0xff] }
 0x17d   : > { %v1300_v61 = vadd.f32 %v1268_v54, %v1132_v51  ;;  %v1301_v57 = vadd.f32 %v1269_v60, %v1036_v55  ;;  %v1272_v51 = vmul.f32 %v2034_v48, %v1240_v38  ;;  %v1273_v55 = vmul.f32 %v2036_v6, %v1241_v17 }
 0x17f   : > { %1332 = vst [vmem:[%s2765_s6 + $0x8] sm:$0xff] %v1300_v61  ;;  %v1189_v61 = vmul.f32 1.442695, %v2631_v50  ;;  %v2038_v4 = vpop.eup %2037 }
 0x180   : > { %1333 = vst [vmem:[%s2765_s6 + $0x10] sm:$0xff] %v1301_v57  ;;  %v1084_v9 = vpop.f32.mrf.mxu2  ;;  %v989_v11 = vpop.f32.mrf.mxu0  ;;  %v1191_v57 = vmul.f32 1.442695, %v2637_v62 }
 0x181   : > { %v1085_v8 = vadd.f32 %v1084_v9, %v2760_v25  ;;  %v1133_v10 = vpop.f32.mrf.mxu3  ;;  %v990_v28 = vadd.f32 %v989_v11, %v2739_v1  ;;  %v1038_v59 = vpop.f32.mrf.mxu1  ;;  %v1242_v9 = vld [vmem:[%s2457_s9 + $0x38] sm:$0xff]  ;;  %v1243_v11 = vld [vmem:[%s2457_s9 + $0x40] sm:$0xff]  ;;  %2041 = vpow2.f32 %v1189_v61 }
 0x182   : > { %v1371_v36 = vpop.xlane.xlu1 %1370  ;;  %v2040_v27 = vpop.eup %2039  ;;  %2043 = vpow2.f32 %v1191_v57  ;;  %v1246_v61 = vld [vmem:[%s2457_s9 + $0x58] sm:$0xff] }
 0x183   : > { %v1134_v13 = vadd.f32 %v1133_v10, %v1085_v8  ;;  %1414 = vst.msk [vmem:[%s2746_s28 + $0x10] sm:$0xff] %vm1411_vm0, %v1371_v36  ;;  %v1039_v24 = vadd.f32 %v1038_v59, %v990_v28  ;;  %v1274_v59 = vmul.f32 %v2038_v4, %v1242_v9  ;;  %v1247_v9 = vld [vmem:[%s2457_s9 + $0x60] sm:$0xff] }
 0x185   : > { %v1302_v29 = vadd.f32 %v1270_v20, %v1134_v13  ;;  %v1303_v15 = vadd.f32 %v1271_v63, %v1039_v24  ;;  %v1275_v13 = vmul.f32 %v2040_v27, %v1243_v11  ;;  %v1193_v24 = vmul.f32 1.442695, %v2639_v0 }
 0x187   : > { %1334 = vst [vmem:[%s2765_s6 + $0x18] sm:$0xff] %v1302_v29  ;;  %v1195_v29 = vmul.f32 1.442695, %v2648_v5  ;;  %v2042_v47 = vpop.eup %2041  ;;  %2045 = vpow2.f32 %v1193_v24 }
 0x188   : > { %1335 = vst [vmem:[%s2765_s6 + $0x20] sm:$0xff] %v1303_v15  ;;  %v1087_v34 = vpop.f32.mrf.mxu2  ;;  %v991_v42 = vpop.f32.mrf.mxu0  ;;  %v1276_v17 = vmul.f32 %v2042_v47, %v1244_v31  ;;  %v1249_v47 = vld [vmem:[%s2457_s9 + $0x70] sm:$0xff] }
 0x189   : > { %v1088_v40 = vadd.f32 %v1087_v34, %v2760_v25  ;;  %v1136_v58 = vpop.f32.mrf.mxu3  ;;  %v992_v37 = vadd.f32 %v991_v42, %v2739_v1  ;;  %v1040_v21 = vpop.f32.mrf.mxu1  ;;  %2047 = vpow2.f32 %v1195_v29 }
 0x18a   : > { %v1374_v41 = vpop.xlane.xlu1 %1373  ;;  %v2044_v48 = vpop.eup %2043 }
 0x18b   : > { %v1137_v43 = vadd.f32 %v1136_v58, %v1088_v40  ;;  %1415 = vst.msk [vmem:[%s2746_s28 + $0x18] sm:$0xff] %vm1411_vm0, %v1374_v41  ;;  %v1041_v54 = vadd.f32 %v1040_v21, %v992_v37  ;;  %v1245_v40 = vld [vmem:[%s2457_s9 + $0x50] sm:$0xff] }
 0x18c   : > { %v1277_v21 = vmul.f32 %v2044_v48, %v1245_v40  ;;  %v1205_v40 = vmul.f32 1.442695, %v2671_v35 }
 0x18d   : > { %v1304_v60 = vadd.f32 %v1272_v51, %v1137_v43  ;;  %v1305_v2 = vadd.f32 %v1273_v55, %v1041_v54  ;;  %v1197_v43 = vmul.f32 1.442695, %v2651_v49  ;;  %v1199_v54 = vmul.f32 1.442695, %v2657_v22  ;;  %v2046_v55 = vpop.eup %2045 }
 0x18f   : > { %1336 = vst [vmem:[%s2765_s6 + $0x28] sm:$0xff] %v1304_v60  ;;  %2049 = vpow2.f32 %v1197_v43 }
 0x190   : > { %1337 = vst [vmem:[%s2765_s6 + $0x30] sm:$0xff] %v1305_v2  ;;  %v1089_v26 = vpop.f32.mrf.mxu2  ;;  %v994_v10 = vpop.f32.mrf.mxu0  ;;  %2051 = vpow2.f32 %v1199_v54 }
 0x191   : > { %v1090_v44 = vadd.f32 %v1089_v26, %v2760_v25  ;;  %v1138_v8 = vpop.f32.mrf.mxu3  ;;  %v995_v50 = vadd.f32 %v994_v10, %v2739_v1  ;;  %v1043_v16 = vpop.f32.mrf.mxu1 }
 0x192   : > { %v1377_v62 = vpop.xlane.xlu2 %1376  ;;  %v2048_v2 = vpop.eup %2047 }
 0x193   : > { %v1139_v28 = vadd.f32 %v1138_v8, %v1090_v44  ;;  %1416 = vst.msk [vmem:[%s2746_s28 + $0x20] sm:$0xff] %vm1411_vm0, %v1377_v62  ;;  %v1044_v36 = vadd.f32 %v1043_v16, %v995_v50  ;;  %v1278_v8 = vmul.f32 %v2046_v55, %v1246_v61  ;;  %v1279_v11 = vmul.f32 %v2048_v2, %v1247_v9 }
 0x194   : > { %v1201_v16 = vmul.f32 1.442695, %v2659_v23  ;;  %v1211_v9 = vmul.f32 1.442695, %v2688_v33 }
 0x195   : > { %v1306_v20 = vadd.f32 %v1274_v59, %v1139_v28  ;;  %v1307_v63 = vadd.f32 %v1275_v13, %v1044_v36  ;;  %v1203_v28 = vmul.f32 1.442695, %v2668_v14  ;;  %v2050_v59 = vpop.eup %2049  ;;  %v1248_v13 = vld [vmem:[%s2457_s9 + $0x68] sm:$0xff] }
 0x196   : > { %2053 = vpow2.f32 %v1201_v16  ;;  %v1280_v48 = vmul.f32 %v2050_v59, %v1248_v13 }
 0x197   : > { %1338 = vst [vmem:[%s2765_s6 + $0x38] sm:$0xff] %v1306_v20  ;;  %v2052_v20 = vpop.eup %2051  ;;  %2055 = vpow2.f32 %v1203_v28 }
 0x198   : > { %1339 = vst [vmem:[%s2765_s6 + $0x40] sm:$0xff] %v1307_v63  ;;  %v1092_v15 = vpop.f32.mrf.mxu2  ;;  %v996_v6 = vpop.f32.mrf.mxu0  ;;  %2057 = vpow2.f32 %v1205_v40 }
 0x199   : > { %v1093_v34 = vadd.f32 %v1092_v15, %v2760_v25  ;;  %v1141_v38 = vpop.f32.mrf.mxu3  ;;  %v997_v0 = vadd.f32 %v996_v6, %v2739_v1  ;;  %v1045_v58 = vpop.f32.mrf.mxu1 }
 0x19a   : > { %v1380_v5 = vpop.xlane.xlu2 %1379 }
 0x19b   : > { %v1142_v42 = vadd.f32 %v1141_v38, %v1093_v34  ;;  %1417 = vst.msk [vmem:[%s2746_s28 + $0x28] sm:$0xff] %vm1411_vm0, %v1380_v5  ;;  %v1046_v37 = vadd.f32 %v1045_v58, %v997_v0  ;;  %v1281_v38 = vmul.f32 %v2052_v20, %v1249_v47  ;;  %v1207_v58 = vmul.f32 1.442695, %v2677_v45 }
 0x19c   : > { %v2054_v5 = vpop.eup %2053  ;;  %v1213_v20 = vmul.f32 1.442695, %v2691_v3 }
 0x19d   : > { %v1308_v41 = vadd.f32 %v1276_v17, %v1142_v42  ;;  %v1309_v51 = vadd.f32 %v1277_v21, %v1046_v37  ;;  %v1250_v17 = vld [vmem:[%s2457_s9 + $0x78] sm:$0xff]  ;;  %v2056_v37 = vpop.eup %2055  ;;  %2059 = vpow2.f32 %v1207_v58 }
 0x19f   : > { %1340 = vst [vmem:[%s2765_s6 + $0x48] sm:$0xff] %v1308_v41 }
 0x1a0   : > { %1341 = vst [vmem:[%s2765_s6 + $0x50] sm:$0xff] %v1309_v51  ;;  %v1094_v60 = vpop.f32.mrf.mxu2  ;;  %v999_v26 = vpop.f32.mrf.mxu0  ;;  %v1251_v51 = vld [vmem:[%s2457_s9 + $0x80] sm:$0xff] }
 0x1a1   : > { %v1095_v57 = vadd.f32 %v1094_v60, %v2760_v25  ;;  %v1143_v4 = vpop.f32.mrf.mxu3  ;;  %v1000_v49 = vadd.f32 %v999_v26, %v2739_v1  ;;  %v1048_v27 = vpop.f32.mrf.mxu1  ;;  %v1282_v60 = vmul.f32 %v2054_v5, %v1250_v17  ;;  %v1283_v2 = vmul.f32 %v2056_v37, %v1251_v51 }
 0x1a2   : > { %v1383_v22 = vpop.xlane.xlu0 %1382  ;;  %v1219_v37 = vmul.f32 1.442695, %v2708_v19 }
 0x1a3   : > { %v1144_v44 = vadd.f32 %v1143_v4, %v1095_v57  ;;  %1418 = vst.msk [vmem:[%s2746_s28 + $0x30] sm:$0xff] %vm1411_vm0, %v1383_v22  ;;  %v1049_v10 = vadd.f32 %v1048_v27, %v1000_v49  ;;  %v1209_v4 = vmul.f32 1.442695, %v2679_v46  ;;  %v2058_v49 = vpop.eup %2057  ;;  %v1252_v22 = vld [vmem:[%s2457_s9 + $0x88] sm:$0xff] }
 0x1a4   : > { %v1284_v28 = vmul.f32 %v2058_v49, %v1252_v22 }
 0x1a5   : > { %v1310_v50 = vadd.f32 %v1278_v8, %v1144_v44  ;;  %v1311_v62 = vadd.f32 %v1279_v11, %v1049_v10  ;;  %v2060_v44 = vpop.eup %2059  ;;  %2061 = vpow2.f32 %v1209_v4 }
 0x1a6   : > { %2063 = vpow2.f32 %v1211_v9  ;;  %v1221_v9 = vmul.f32 1.442695, %v2711_v30 }
 0x1a7   : > { %1342 = vst [vmem:[%s2765_s6 + $0x58] sm:$0xff] %v1310_v50  ;;  %v1253_v50 = vld [vmem:[%s2457_s9 + $0x90] sm:$0xff]  ;;  %2065 = vpow2.f32 %v1213_v20  ;;  %v1225_v20 = vmul.f32 1.442695, %v2720_v7 }
 0x1a8   : > { %1343 = vst [vmem:[%s2765_s6 + $0x60] sm:$0xff] %v1311_v62  ;;  %v1097_v36 = vpop.f32.mrf.mxu2  ;;  %v1001_v29 = vpop.f32.mrf.mxu0 }
 0x1a9   : > { %v1098_v24 = vadd.f32 %v1097_v36, %v2760_v25  ;;  %v1146_v63 = vpop.f32.mrf.mxu3  ;;  %v1002_v23 = vadd.f32 %v1001_v29, %v2739_v1  ;;  %v1050_v15 = vpop.f32.mrf.mxu1  ;;  %v1285_v36 = vmul.f32 %v2060_v44, %v1253_v50 }
 0x1aa   : > { %v1386_v14 = vpop.xlane.xlu1 %1385 }
 0x1ab   : > { %v1147_v31 = vadd.f32 %v1146_v63, %v1098_v24  ;;  %1419 = vst.msk [vmem:[%s2746_s28 + $0x38] sm:$0xff] %vm1411_vm0, %v1386_v14  ;;  %v1051_v34 = vadd.f32 %v1050_v15, %v1002_v23  ;;  %v1215_v63 = vmul.f32 1.442695, %v2697_v12  ;;  %v2062_v29 = vpop.eup %2061  ;;  %v1254_v23 = vld [vmem:[%s2457_s9 + $0x98] sm:$0xff] }
 0x1ac   : > { %v2064_v15 = vpop.eup %2063  ;;  %v1286_v40 = vmul.f32 %v2062_v29, %v1254_v23  ;;  %v1260_v23 = vld [vmem:[%s2457_s9 + $0xc8] sm:$0xff] }
 0x1ad   : > { %v1312_v6 = vadd.f32 %v1280_v48, %v1147_v31  ;;  %v1313_v0 = vadd.f32 %v1281_v38, %v1051_v34  ;;  %v1255_v34 = vld [vmem:[%s2457_s9 + $0xa0] sm:$0xff]  ;;  %2067 = vpow2.f32 %v1215_v63  ;;  %v1227_v63 = vmul.f32 1.442695, %v2730_v32 }
 0x1ae   : > { %v1287_v58 = vmul.f32 %v2064_v15, %v1255_v34  ;;  %v1261_v34 = vld [vmem:[%s2457_s9 + $0xd0] sm:$0xff] }
 0x1af   : > { %1344 = vst [vmem:[%s2765_s6 + $0x68] sm:$0xff] %v1312_v6 }
 0x1b0   : > { %1345 = vst [vmem:[%s2765_s6 + $0x70] sm:$0xff] %v1313_v0  ;;  %v1099_v42 = vpop.f32.mrf.mxu2  ;;  %v1004_v43 = vpop.f32.mrf.mxu0 }
 0x1b1   : > { %v1100_v21 = vadd.f32 %v1099_v42, %v2760_v25  ;;  %v1148_v41 = vpop.f32.mrf.mxu3  ;;  %v1005_v35 = vadd.f32 %v1004_v43, %v2739_v1  ;;  %v1053_v54 = vpop.f32.mrf.mxu1  ;;  %v1217_v42 = vmul.f32 1.442695, %v2699_v52  ;;  %v1256_v43 = vld [vmem:[%s2457_s9 + $0xa8] sm:$0xff] }
 0x1b2   : > { %v1389_v45 = vpop.xlane.xlu2 %1388 }
 0x1b3   : > { %v1149_v55 = vadd.f32 %v1148_v41, %v1100_v21  ;;  %1420 = vst.msk [vmem:[%s2746_s28 + $0x40] sm:$0xff] %vm1411_vm0, %v1389_v45  ;;  %v1054_v61 = vadd.f32 %v1053_v54, %v1005_v35  ;;  %v2066_v21 = vpop.eup %2065  ;;  %2069 = vpow2.f32 %v1217_v42  ;;  %v1231_v42 = vmul.f32 1.442695, %v2751_v53 }
 0x1b4   : > { %v2068_v51 = vpop.eup %2067  ;;  %2071 = vpow2.f32 %v1219_v37 }
 0x1b5   : > { %v1314_v57 = vadd.f32 %v1282_v60, %v1149_v55  ;;  %v1315_v26 = vadd.f32 %v1283_v2, %v1054_v61  ;;  %v1257_v55 = vld [vmem:[%s2457_s9 + $0xb0] sm:$0xff]  ;;  %v1288_v2 = vmul.f32 %v2066_v21, %v1256_v43  ;;  %2073 = vpow2.f32 %v1221_v9  ;;  %v1262_v21 = vld [vmem:[%s2457_s9 + $0xd8] sm:$0xff]  ;;  %v1264_v9 = vld [vmem:[%s2457_s9 + $0xe8] sm:$0xff] }
 0x1b6   : > { %v1289_v4 = vmul.f32 %v2068_v51, %v1257_v55 }
 0x1b7   : > { %1346 = vst [vmem:[%s2765_s6 + $0x78] sm:$0xff] %v1314_v57 }
 0x1b8   : > { %1347 = vst [vmem:[%s2765_s6 + $0x80] sm:$0xff] %v1315_v26  ;;  %v1102_v27 = vpop.f32.mrf.mxu2  ;;  %v1006_v11 = vpop.f32.mrf.mxu0 }
 0x1b9   : > { %v1103_v8 = vadd.f32 %v1102_v27, %v2760_v25  ;;  %v1151_v10 = vpop.f32.mrf.mxu3  ;;  %v1007_v46 = vadd.f32 %v1006_v11, %v2739_v1  ;;  %v1055_v16 = vpop.f32.mrf.mxu1  ;;  %v1223_v27 = vmul.f32 1.442695, %v2718_v39 }
 0x1ba   : > { %v1392_v33 = vpop.xlane.xlu0 %1391  ;;  %v2070_v22 = vpop.eup %2069 }
 0x1bb   : > { %v1152_v62 = vadd.f32 %v1151_v10, %v1103_v8  ;;  %1421 = vst.msk [vmem:[%s2746_s28 + $0x48] sm:$0xff] %vm1411_vm0, %v1392_v33  ;;  %v1056_v59 = vadd.f32 %v1055_v16, %v1007_v46  ;;  %v1258_v8 = vld [vmem:[%s2457_s9 + $0xb8] sm:$0xff]  ;;  %v2072_v10 = vpop.eup %2071  ;;  %v1259_v16 = vld [vmem:[%s2457_s9 + $0xc0] sm:$0xff]  ;;  %2075 = vpow2.f32 %v1223_v27 }
 0x1bc   : > { %v2074_v29 = vpop.eup %2073  ;;  %2077 = vpow2.f32 %v1225_v20 }
 0x1bd   : > { %v1316_v13 = vadd.f32 %v1284_v28, %v1152_v62  ;;  %v1317_v24 = vadd.f32 %v1285_v36, %v1056_v59  ;;  %v1290_v28 = vmul.f32 %v2070_v22, %v1258_v8  ;;  %v1291_v36 = vmul.f32 %v2072_v10, %v1259_v16  ;;  %v1265_v8 = vld [vmem:[%s2457_s9 + $0xf0] sm:$0xff] }
 0x1be   : > { %2079 = vpow2.f32 %v1227_v63 }
 0x1bf   : > { %1348 = vst [vmem:[%s2765_s6 + $0x88] sm:$0xff] %v1316_v13 }
 0x1c0   : > { %1349 = vst [vmem:[%s2765_s6 + $0x90] sm:$0xff] %v1317_v24  ;;  %v1104_v47 = vpop.f32.mrf.mxu2  ;;  %v1009_v48 = vpop.f32.mrf.mxu0 }
 0x1c1   : > { %v1105_v14 = vadd.f32 %v1104_v47, %v2760_v25  ;;  %v1153_v31 = vpop.f32.mrf.mxu3  ;;  %v1010_v3 = vadd.f32 %v1009_v48, %v2739_v1  ;;  %v1058_v38 = vpop.f32.mrf.mxu1 }
 0x1c2   : > { %v1395_v12 = vpop.xlane.xlu1 %1394  ;;  %v2076_v15 = vpop.eup %2075 }
 0x1c3   : > { %v1154_v6 = vadd.f32 %v1153_v31, %v1105_v14  ;;  %1422 = vst.msk [vmem:[%s2746_s28 + $0x50] sm:$0xff] %vm1411_vm0, %v1395_v12  ;;  %v1059_v0 = vadd.f32 %v1058_v38, %v1010_v3  ;;  %v1292_v12 = vmul.f32 %v2074_v29, %v1260_v23 }
 0x1c5   : > { %v1318_v5 = vadd.f32 %v1286_v40, %v1154_v6  ;;  %v1319_v17 = vadd.f32 %v1287_v58, %v1059_v0  ;;  %v1293_v40 = vmul.f32 %v2076_v15, %v1261_v34  ;;  %v1229_v58 = vmul.f32 1.442695, %v2733_v56 }
 0x1c7   : > { %1350 = vst [vmem:[%s2765_s6 + $0x98] sm:$0xff] %v1318_v5  ;;  %2081 = vpow2.f32 %v1229_v58 }
 0x1c8   : > { %1351 = vst [vmem:[%s2765_s6 + $0xa0] sm:$0xff] %v1319_v17  ;;  %v1107_v41 = vpop.f32.mrf.mxu2  ;;  %v1011_v45 = vpop.f32.mrf.mxu0  ;;  %2083 = vpow2.f32 %v1231_v42 }
 0x1c9   : > { %v1108_v35 = vadd.f32 %v1107_v41, %v2760_v25  ;;  %v1156_v54 = vpop.f32.mrf.mxu3  ;;  %v1012_v52 = vadd.f32 %v1011_v45, %v2739_v1  ;;  %v1060_v60 = vpop.f32.mrf.mxu1 }
 0x1ca   : > { %v1398_v19 = vpop.xlane.xlu2 %1397  ;;  %v2078_v17 = vpop.eup %2077 }
 0x1cb   : > { %v1157_v61 = vadd.f32 %v1156_v54, %v1108_v35  ;;  %1423 = vst.msk [vmem:[%s2746_s28 + $0x58] sm:$0xff] %vm1411_vm0, %v1398_v19  ;;  %v1061_v57 = vadd.f32 %v1060_v60, %v1012_v52  ;;  %v2080_v41 = vpop.eup %2079  ;;  %v1263_v54 = vld [vmem:[%s2457_s9 + $0xe0] sm:$0xff]  ;;  %v1294_v52 = vmul.f32 %v2078_v17, %v1262_v21 }
 0x1cc   : > { %v1295_v19 = vmul.f32 %v2080_v41, %v1263_v54 }
 0x1cd   : > { %v1320_v26 = vadd.f32 %v1288_v2, %v1157_v61  ;;  %v1321_v49 = vadd.f32 %v1289_v4, %v1061_v57  ;;  %v1233_v2 = vmul.f32 1.442695, %v2753_v18  ;;  %v2082_v4 = vpop.eup %2081 }
 0x1cf   : > { %1352 = vst [vmem:[%s2765_s6 + $0xa8] sm:$0xff] %v1320_v26  ;;  %2085 = vpow2.f32 %v1233_v2 }
 0x1d0   : > { %1353 = vst [vmem:[%s2765_s6 + $0xb0] sm:$0xff] %v1321_v49  ;;  %v1109_v44 = vpop.f32.mrf.mxu2  ;;  %v1014_v46 = vpop.f32.mrf.mxu0 }
 0x1d1   : > { %v1110_v11 = vadd.f32 %v1109_v44, %v2760_v25  ;;  %v1158_v50 = vpop.f32.mrf.mxu3  ;;  %v1015_v30 = vadd.f32 %v1014_v46, %v2739_v1  ;;  %v1063_v33 = vpop.f32.mrf.mxu1 }
 0x1d2   : > { %v1401_v39 = vpop.xlane.xlu0 %1400  ;;  %v2084_v49 = vpop.eup %2083 }
 0x1d3   : > { %v1159_v62 = vadd.f32 %v1158_v50, %v1110_v11  ;;  %1424 = vst.msk [vmem:[%s2746_s28 + $0x60] sm:$0xff] %vm1411_vm0, %v1401_v39  ;;  %v1064_v59 = vadd.f32 %v1063_v33, %v1015_v30  ;;  %v1296_v50 = vmul.f32 %v2082_v4, %v1264_v9  ;;  %v1297_v30 = vmul.f32 %v2084_v49, %v1265_v8 }
 0x1d5   : > { %v1322_v13 = vadd.f32 %v1290_v28, %v1159_v62  ;;  %v1323_v24 = vadd.f32 %v1291_v36, %v1064_v59  ;;  %v1266_v28 = vld [vmem:[%s2457_s9 + $0xf8] sm:$0xff] }
 0x1d7   : > { %1354 = vst [vmem:[%s2765_s6 + $0xb8] sm:$0xff] %v1322_v13 }
 0x1d8   : > { %1355 = vst [vmem:[%s2765_s6 + $0xc0] sm:$0xff] %v1323_v24  ;;  %v1112_v47 = vpop.f32.mrf.mxu2  ;;  %v1016_v48 = vpop.f32.mrf.mxu0 }
 0x1d9   : > { %v1113_v14 = vadd.f32 %v1112_v47, %v2760_v25  ;;  %v1161_v31 = vpop.f32.mrf.mxu3  ;;  %v1017_v7 = vadd.f32 %v1016_v48, %v2739_v1  ;;  %v1065_v3 = vpop.f32.mrf.mxu1 }
 0x1da   : > { %v1404_v32 = vpop.xlane.xlu1 %1403 }
 0x1db   : > { %v1162_v38 = vadd.f32 %v1161_v31, %v1113_v14  ;;  %1425 = vst.msk [vmem:[%s2746_s28 + $0x68] sm:$0xff] %vm1411_vm0, %v1404_v32  ;;  %v1066_v6 = vadd.f32 %v1065_v3, %v1017_v7 }
 0x1dd   : > { %v1324_v0 = vadd.f32 %v1292_v12, %v1162_v38  ;;  %v1325_v5 = vadd.f32 %v1293_v40, %v1066_v6 }
 0x1df   : > { %1356 = vst [vmem:[%s2765_s6 + $0xc8] sm:$0xff] %v1324_v0 }
 0x1e0   : > { %1357 = vst [vmem:[%s2765_s6 + $0xd0] sm:$0xff] %v1325_v5  ;;  %v1114_v37 = vpop.f32.mrf.mxu2  ;;  %v1019_v35 = vpop.f32.mrf.mxu0 }
 0x1e1   : > { %v1115_v43 = vadd.f32 %v1114_v37, %v2760_v25  ;;  %v1163_v51 = vpop.f32.mrf.mxu3  ;;  %v1020_v56 = vadd.f32 %v1019_v35, %v2739_v1  ;;  %v1068_v45 = vpop.f32.mrf.mxu1 }
 0x1e2   : > { %v1407_v53 = vpop.xlane.xlu2 %1406 }
 0x1e3   : > { %v1164_v55 = vadd.f32 %v1163_v51, %v1115_v43  ;;  %1426 = vst.msk [vmem:[%s2746_s28 + $0x70] sm:$0xff] %vm1411_vm0, %v1407_v53  ;;  %v1069_v60 = vadd.f32 %v1068_v45, %v1020_v56 }
 0x1e5   : > { %v1326_v61 = vadd.f32 %v1294_v52, %v1164_v55  ;;  %v1327_v57 = vadd.f32 %v1295_v19, %v1069_v60 }
 0x1e7   : > { %1358 = vst [vmem:[%s2765_s6 + $0xd8] sm:$0xff] %v1326_v61 }
 0x1e8   : > { %1359 = vst [vmem:[%s2765_s6 + $0xe0] sm:$0xff] %v1327_v57  ;;  %v1117_v26 = vpop.f32.mrf.mxu2  ;;  %v1021_v44 = vpop.f32.mrf.mxu0 }
 0x1e9   : > { %v1118_v27 = vadd.f32 %v1117_v26, %v2760_v25  ;;  %v1166_v22 = vpop.f32.mrf.mxu3  ;;  %v1022_v10 = vadd.f32 %v1021_v44, %v2739_v1  ;;  %v1070_v46 = vpop.f32.mrf.mxu1 }
 0x1ea   : > { %v1410_v18 = vpop.xlane.xlu0 %1409  ;;  %v2086_v1 = vpop.eup %2085 }
 0x1eb   : > { %v1167_v11 = vadd.f32 %v1166_v22, %v1118_v27  ;;  %1427 = vst.msk [vmem:[%s2746_s28 + $0x78] sm:$0xff] %vm1411_vm0, %v1410_v18  ;;  %v1071_v16 = vadd.f32 %v1070_v46, %v1022_v10  ;;  %v1298_v20 = vmul.f32 %v2086_v1, %v1266_v28 }
 0x1ed   : > { %v1328_v33 = vadd.f32 %v1296_v50, %v1167_v11  ;;  %v1329_v39 = vadd.f32 %v1297_v30, %v1071_v16 }
 0x1ef   : > { %1360 = vst [vmem:[%s2765_s6 + $0xe8] sm:$0xff] %v1328_v33 }
 0x1f0   : > { %1361 = vst [vmem:[%s2765_s6 + $0xf0] sm:$0xff] %v1329_v39  ;;  %v1119_v62 = vpop.f32.mrf.mxu2 }
 0x1f1   : > { %v1120_v59 = vadd.f32 %v1119_v62, %v2760_v25  ;;  %v1168_v36 = vpop.f32.mrf.mxu3 }
 0x1f3   : > { %v1169_v13 = vadd.f32 %v1168_v36, %v1120_v59 }
 0x1f5   : > { %v1330_v24 = vadd.f32 %v1298_v20, %v1169_v13 }
 0x1f7   : > { %1362 = vst [vmem:[%s2765_s6 + $0xf8] sm:$0xff] %v1330_v24 }
 0x1f8   : > { %2234 = shalt.err (!%p2231_p12)
}
 0x1f9   : > { %s2291_s27 = smov 256   ;;  %s2292_s24 = smov 16  }
 0x1fa   : > { %1959 = dma.vmem_to_hbm [thread:$0]  (%p2392_p3), %s1448_s8, 4096, %s1450_s22, %s1429_s16, %s2291_s27, %s2291_s27, %s2292_s24  }
 0x1fb PF: > { %s1468_s13 = sand.u32 1, %s2273_s18   ;;  %p2976_p13 = scmp.ge.s32.totalorder %s2285_s21, 2 }
 0x1fc   : > { %s1469_s10 = scalar_lea.sflag [#allocation4], %s1468_s13 }
 0x1fd   : > { %p1976_p0 = pnand %p2976_p13, %p2358_p6 }
 0x1ff   : > { %p1977_p5 = pneg %p1976_p0 }
 0x201   : > { %2268 = dma.done.wait (%p1977_p5), %s1469_s10, 4096  }
 0x202   : > { %2270 = vsyncadd (%p1977_p5), %s1469_s10, 4294963200  ;;  %s2977_s26 = sld [smem:[#allocation16_spill]]  ;;  %p23_p7 = scmp.ge.s32.totalorder %s2382_s14, 4  }
 0x203   : > { %s2978_s18 = smov %s2277_s19  ;;  %s2979_s19 = smov %s2281_s20 }
 0x204   : > { %s2981_s21 = smov %s2382_s14  ;;  %25 = sbr.rel (!%p23_p7) target bundleno = 12 (0xc), region = 114 }
 0x208   : > { %s2980_s20 = smov %s2977_s26 }
 0x209   :  { %1483 = vsyncpa [#allocation3], 1 }
 0x20a   :  { %1485 = vsyncpa [#allocation3 + $0x1], 1 }
 0x20b   :  { %1486 = vsyncpa [#allocation6], 1 }
 0x20c   :  { %1488 = vsyncpa [#allocation6 + $0x1], 1 }
 0x20d   :  { %1489 = vsyncpa [#allocation9], 1 }
 0x20e   :  { %1490 = vsyncpa [#allocation4], 1 }
 0x20f   :  { %1492 = vsyncpa [#allocation4 + $0x1], 1 }

</bundles_post_ra>
